<compile_context>
chip_gen: v7x
topology: tpu7x:2x2x1
jax: 0.10.0
libtpu: 0.0.40
codegen_flags: <defaults>
</compile_context>

<pallas_src>
import functools

import jax
import jax.numpy as jnp
from jax import lax
from jax.experimental import pallas as pl
from jax.experimental.pallas import tpu as pltpu


def _ffn_ln_kernel(x_ref, w1_ref, b1_ref, w2_ref, b2_ref, gamma_ref, beta_ref,
                   o_ref, *, s_block, eps):
    # x_ref     : (B, Sblk, E)  activations, native [B, S, E] walk (no transpose)
    # w1_ref    : (Sblk, F, E)  per-position layer1 weights (native nn.Linear layout)
    # b1_ref    : (Sblk, F)
    # w2_ref    : (Sblk, E, F)  per-position layer2 weights (native layout)
    # b2_ref    : (Sblk, E)
    # gamma/beta: (1, E)        LayerNorm affine params (VMEM-resident across grid)
    # o_ref     : (B, Sblk, E)  float32 output
    xb = x_ref[...]                                  # (B, Sblk, E), e.g. bf16
    b1 = b1_ref[...].astype(jnp.float32)             # (Sblk, F)
    b2 = b2_ref[...].astype(jnp.float32)             # (Sblk, E)
    gamma = gamma_ref[...].astype(jnp.float32)       # (1, E)
    beta = beta_ref[...].astype(jnp.float32)         # (1, E)

    # Each position has its own weight pair, so the matmuls cannot be merged
    # across s; the unrolled loop still amortizes grid-step overhead and the
    # weight DMAs are already batched over the whole block.
    for s in range(s_block):
        xs = xb[:, s, :]                             # (B, E)
        w1_s = w1_ref[s]                             # (F, E)  -> x @ W1^T
        w2_s = w2_ref[s]                             # (E, F)  -> h @ W2^T

        h = lax.dot_general(xs.astype(w1_s.dtype), w1_s,
                            (((1,), (1,)), ((), ())),
                            preferred_element_type=jnp.float32)
        h = h + b1[s:s + 1, :]                       # (B, F), f32

        y = lax.dot_general(h.astype(w2_s.dtype), w2_s,
                            (((1,), (1,)), ((), ())),
                            preferred_element_type=jnp.float32)
        y = y + b2[s:s + 1, :]                       # (B, E), f32

        # TODO(synk): dropout is identity here (inference path, no RNG).
        z = y + xs.astype(jnp.float32)               # residual (pre-FFN x)

        # LayerNorm over E, in f32.
        mean = jnp.mean(z, axis=-1, keepdims=True)
        cent = z - mean
        var = jnp.mean(cent * cent, axis=-1, keepdims=True)
        zn = cent * lax.rsqrt(var + eps)
        res = zn * gamma + beta                      # (B, E)

        o_ref[:, s:s + 1, :] = res[:, None, :].astype(o_ref.dtype)


def feed_forwarder(x, w1, b1, w2, b2, gamma, beta, *, eps=1e-5, s_block=8):
    """x: [B, S, E]; w1: [S, F, E]; b1: [S, F]; w2: [S, E, F]; b2: [S, E];
    gamma, beta: [E]. Returns [B, S, E] float32.

    Weights/activations may be bf16 (recommended: the kernel is HBM-bound on
    weight bytes); accumulation, residual and LayerNorm are always f32.
    """
    B, S, E = x.shape
    F = w1.shape[1]

    # Keep the blocked S dim sublane-aligned (second-to-last dim of x/out blocks).
    s_block = max(8, -(-s_block // 8) * 8)
    S_pad = pl.cdiv(S, s_block) * s_block
    if S_pad != S:
        pad = S_pad - S
        x = jnp.pad(x, ((0, 0), (0, pad), (0, 0)))
        w1 = jnp.pad(w1, ((0, pad), (0, 0), (0, 0)))
        b1 = jnp.pad(b1, ((0, pad), (0, 0)))
        w2 = jnp.pad(w2, ((0, pad), (0, 0), (0, 0)))
        b2 = jnp.pad(b2, ((0, pad), (0, 0)))

    gamma_r = gamma.reshape(1, E)
    beta_r = beta.reshape(1, E)

    grid = (S_pad // s_block,)

    grid_spec = pltpu.PrefetchScalarGridSpec(
        num_scalar_prefetch=0,
        grid=grid,
        in_specs=[
            pl.BlockSpec((B, s_block, E), lambda i: (0, i, 0)),   # x (native layout)
            pl.BlockSpec((s_block, F, E), lambda i: (i, 0, 0)),   # w1 (native nn.Linear)
            pl.BlockSpec((s_block, F), lambda i: (i, 0)),         # b1 (blocked with weights)
            pl.BlockSpec((s_block, E, F), lambda i: (i, 0, 0)),   # w2 (native layout)
            pl.BlockSpec((s_block, E), lambda i: (i, 0)),         # b2
            pl.BlockSpec((1, E), lambda i: (0, 0)),               # gamma (VMEM-resident)
            pl.BlockSpec((1, E), lambda i: (0, 0)),               # beta  (VMEM-resident)
        ],
        out_specs=pl.BlockSpec((B, s_block, E), lambda i: (0, i, 0)),
    )

    out = pl.pallas_call(
        functools.partial(_ffn_ln_kernel, s_block=s_block, eps=eps),
        out_shape=jax.ShapeDtypeStruct((B, S_pad, E), jnp.float32),
        grid_spec=grid_spec,
        compiler_params=pltpu.CompilerParams(
            dimension_semantics=("parallel",),        # >=2 steps keeps both v7x TCs busy
            vmem_limit_bytes=32 * 1024 * 1024,        # re-derive for production E/F (v7x: 64 MiB physical)
        ),
    )(x, w1, b1, w2, b2, gamma_r, beta_r)

    return out[:, :S, :]


def _reference(x, w1, b1, w2, b2, gamma, beta, eps=1e-5):
    # Pure-JAX reference mirroring the PyTorch forward and the kernel's precision
    # choices (low-precision MXU inputs, f32 accumulation, f32 residual + LN).
    f32 = jnp.float32
    x_lo = x.astype(w1.dtype)
    h = jnp.einsum('bse,sfe->bsf', x_lo, w1,
                   preferred_element_type=f32) + b1[None].astype(f32)
    y = jnp.einsum('bsf,sef->bse', h.astype(w2.dtype), w2,
                   preferred_element_type=f32) + b2[None].astype(f32)
    z = y + x.astype(f32)
    mean = jnp.mean(z, axis=-1, keepdims=True)
    var = jnp.mean((z - mean) ** 2, axis=-1, keepdims=True)
    return (z - mean) / jnp.sqrt(var + eps) * gamma.astype(f32) + beta.astype(f32)


if __name__ == "__main__":
    B, S, E, F = 2, 16, 32, 64   # batch, max_seq_len, embedding_dim, FFN_dim

    key = jax.random.PRNGKey(0)
    ks = jax.random.split(key, 5)
    # Activations / weights carried in bf16 (kernel is HBM-bound on weight bytes);
    # biases and LayerNorm params stay f32; accumulation is f32.
    x = jax.random.normal(ks[0], (B, S, E), dtype=jnp.float32).astype(jnp.bfloat16)
    # Per-position Linear params (shapes follow nn.Linear: weight [out, in]).
    w1 = (jax.random.normal(ks[1], (S, F, E), dtype=jnp.float32) * 0.1).astype(jnp.bfloat16)
    b1 = jax.random.normal(ks[2], (S, F), dtype=jnp.float32) * 0.1
    w2 = (jax.random.normal(ks[3], (S, E, F), dtype=jnp.float32) * 0.1).astype(jnp.bfloat16)
    b2 = jax.random.normal(ks[4], (S, E), dtype=jnp.float32) * 0.1
    # LayerNorm affine params (PyTorch default init: ones / zeros).
    gamma = jnp.ones((E,), dtype=jnp.float32)
    beta = jnp.zeros((E,), dtype=jnp.float32)

    out = feed_forwarder(x, w1, b1, w2, b2, gamma, beta, s_block=8)
    out = jax.block_until_ready(out)

    ref = _reference(x, w1, b1, w2, b2, gamma, beta)
    assert out.shape == (B, S, E)
    assert jnp.allclose(out, ref, atol=5e-3, rtol=5e-3), "mismatch vs reference"

    print("KERNEL_OK")
</pallas_src>

<mosaic_0001>
module attributes {stable_mosaic.version = 11 : i64} {
  func.func @_ffn_ln_kernel(%arg0: i32, %arg1: memref<2x8x32xbf16, #tpu.memory_space<vmem>>, %arg2: memref<8x64x32xbf16, #tpu.memory_space<vmem>>, %arg3: memref<8x64xf32, #tpu.memory_space<vmem>>, %arg4: memref<8x32x64xbf16, #tpu.memory_space<vmem>>, %arg5: memref<8x32xf32, #tpu.memory_space<vmem>>, %arg6: memref<1x32xf32, #tpu.memory_space<vmem>>, %arg7: memref<1x32xf32, #tpu.memory_space<vmem>>, %arg8: memref<2x8x32xf32, #tpu.memory_space<vmem>>) attributes {dimension_semantics = [#tpu.dimension_semantics<parallel>], iteration_bounds = array<i64: 2>, scalar_prefetch = 0 : i64, scratch_operands = 0 : i64, tpu.core_type = #tpu.core_type<tc>, window_params = [{transform_indices = @transform_0, window_bounds = array<i64: 2, 8, 32>}, {transform_indices = @transform_1, window_bounds = array<i64: 8, 64, 32>}, {transform_indices = @transform_2, window_bounds = array<i64: 8, 64>}, {transform_indices = @transform_3, window_bounds = array<i64: 8, 32, 64>}, {transform_indices = @transform_4, window_bounds = array<i64: 8, 32>}, {pipeline_mode = #tpu.pipeline_mode<synchronous>, transform_indices = @transform_5, window_bounds = array<i64: 1, 32>}, {pipeline_mode = #tpu.pipeline_mode<synchronous>, transform_indices = @transform_6, window_bounds = array<i64: 1, 32>}, {transform_indices = @transform_7, window_bounds = array<i64: 2, 8, 32>}]} {
    %c0 = arith.constant 0 : index
    %c0_0 = arith.constant 0 : index
    %c0_1 = arith.constant 0 : index
    %0 = vector.load %arg1[%c0, %c0_0, %c0_1] : memref<2x8x32xbf16, #tpu.memory_space<vmem>>, vector<2x8x32xbf16>
    %c0_2 = arith.constant 0 : index
    %c0_3 = arith.constant 0 : index
    %1 = vector.load %arg3[%c0_2, %c0_3] : memref<8x64xf32, #tpu.memory_space<vmem>>, vector<8x64xf32>
    %c0_4 = arith.constant 0 : index
    %c0_5 = arith.constant 0 : index
    %2 = vector.load %arg5[%c0_4, %c0_5] : memref<8x32xf32, #tpu.memory_space<vmem>>, vector<8x32xf32>
    %c0_6 = arith.constant 0 : index
    %c0_7 = arith.constant 0 : index
    %3 = vector.load %arg6[%c0_6, %c0_7] : memref<1x32xf32, #tpu.memory_space<vmem>>, vector<1x32xf32>
    %c0_8 = arith.constant 0 : index
    %c0_9 = arith.constant 0 : index
    %4 = vector.load %arg7[%c0_8, %c0_9] : memref<1x32xf32, #tpu.memory_space<vmem>>, vector<1x32xf32>
    %5 = vector.extract_strided_slice %0 {offsets = [0, 0, 0], sizes = [2, 1, 32], strides = [1, 1, 1]} : vector<2x8x32xbf16> to vector<2x1x32xbf16>
    %6 = vector.shape_cast %5 : vector<2x1x32xbf16> to vector<2x32xbf16>
    %c0_10 = arith.constant 0 : index
    %c0_11 = arith.constant 0 : index
    %c0_12 = arith.constant 0 : index
    %7 = vector.load %arg2[%c0_10, %c0_11, %c0_12] : memref<8x64x32xbf16, #tpu.memory_space<vmem>>, vector<1x64x32xbf16>
    %8 = vector.shape_cast %7 : vector<1x64x32xbf16> to vector<64x32xbf16>
    %c0_13 = arith.constant 0 : index
    %c0_14 = arith.constant 0 : index
    %c0_15 = arith.constant 0 : index
    %9 = vector.load %arg4[%c0_13, %c0_14, %c0_15] : memref<8x32x64xbf16, #tpu.memory_space<vmem>>, vector<1x32x64xbf16>
    %10 = vector.shape_cast %9 : vector<1x32x64xbf16> to vector<32x64xbf16>
    %cst = arith.constant dense<0.000000e+00> : vector<2x64xf32>
    %11 = tpu.matmul %6, %8, %cst {dimension_numbers = #tpu.dot_dimension_numbers<[1], [1], [0], [0], [0, 0, 1, 0], [], []>} : vector<2x32xbf16>, vector<64x32xbf16>, vector<2x64xf32> -> vector<2x64xf32>
    %12 = vector.extract_strided_slice %1 {offsets = [0, 0], sizes = [1, 64], strides = [1, 1]} : vector<8x64xf32> to vector<1x64xf32>
    %13 = vector.broadcast %12 : vector<1x64xf32> to vector<2x64xf32>
    %14 = arith.addf %11, %13 : vector<2x64xf32>
    %15 = arith.truncf %14 : vector<2x64xf32> to vector<2x64xbf16>
    %cst_16 = arith.constant dense<0.000000e+00> : vector<2x32xf32>
    %16 = tpu.matmul %15, %10, %cst_16 {dimension_numbers = #tpu.dot_dimension_numbers<[1], [1], [0], [0], [0, 0, 1, 0], [], []>} : vector<2x64xbf16>, vector<32x64xbf16>, vector<2x32xf32> -> vector<2x32xf32>
    %17 = vector.extract_strided_slice %2 {offsets = [0, 0], sizes = [1, 32], strides = [1, 1]} : vector<8x32xf32> to vector<1x32xf32>
    %18 = vector.broadcast %17 : vector<1x32xf32> to vector<2x32xf32>
    %19 = arith.addf %16, %18 : vector<2x32xf32>
    %20 = arith.extf %6 : vector<2x32xbf16> to vector<2x32xf32>
    %21 = arith.addf %19, %20 : vector<2x32xf32>
    %cst_17 = arith.constant dense<0.000000e+00> : vector<2xf32>
    %22 = vector.multi_reduction <add>, %21, %cst_17 [1] : vector<2x32xf32> to vector<2xf32>
    %23 = vector.shape_cast %22 : vector<2xf32> to vector<2x1xf32>
    %cst_18 = arith.constant 3.200000e+01 : f32
    %24 = vector.broadcast %cst_18 : f32 to vector<2x1xf32>
    %25 = arith.divf %23, %24 : vector<2x1xf32>
    %26 = vector.broadcast %25 : vector<2x1xf32> to vector<2x32xf32>
    %27 = arith.subf %21, %26 : vector<2x32xf32>
    %28 = arith.mulf %27, %27 : vector<2x32xf32>
    %cst_19 = arith.constant dense<0.000000e+00> : vector<2xf32>
    %29 = vector.multi_reduction <add>, %28, %cst_19 [1] : vector<2x32xf32> to vector<2xf32>
    %30 = vector.shape_cast %29 : vector<2xf32> to vector<2x1xf32>
    %cst_20 = arith.constant 3.200000e+01 : f32
    %31 = vector.broadcast %cst_20 : f32 to vector<2x1xf32>
    %32 = arith.divf %30, %31 : vector<2x1xf32>
    %cst_21 = arith.constant 9.99999974E-6 : f32
    %33 = vector.broadcast %cst_21 : f32 to vector<2x1xf32>
    %34 = arith.addf %32, %33 : vector<2x1xf32>
    %35 = math.rsqrt %34 : vector<2x1xf32>
    %36 = vector.broadcast %35 : vector<2x1xf32> to vector<2x32xf32>
    %37 = arith.mulf %27, %36 : vector<2x32xf32>
    %38 = vector.broadcast %3 : vector<1x32xf32> to vector<2x32xf32>
    %39 = arith.mulf %37, %38 : vector<2x32xf32>
    %40 = vector.broadcast %4 : vector<1x32xf32> to vector<2x32xf32>
    %41 = arith.addf %39, %40 : vector<2x32xf32>
    %42 = vector.shape_cast %41 : vector<2x32xf32> to vector<2x1x32xf32>
    %c0_22 = arith.constant 0 : index
    %c0_23 = arith.constant 0 : index
    %c0_24 = arith.constant 0 : index
    %43 = vector.load %arg8[%c0_22, %c0_23, %c0_24] : memref<2x8x32xf32, #tpu.memory_space<vmem>>, vector<2x1x32xf32>
    tpu.vector_store %arg8[%c0_22, %c0_23, %c0_24], %42 {strides = array<i32>} : memref<2x8x32xf32, #tpu.memory_space<vmem>>, vector<2x1x32xf32>,
    %44 = vector.extract_strided_slice %0 {offsets = [0, 1, 0], sizes = [2, 1, 32], strides = [1, 1, 1]} : vector<2x8x32xbf16> to vector<2x1x32xbf16>
    %45 = vector.shape_cast %44 : vector<2x1x32xbf16> to vector<2x32xbf16>
    %c1 = arith.constant 1 : index
    %c0_25 = arith.constant 0 : index
    %c0_26 = arith.constant 0 : index
    %46 = vector.load %arg2[%c1, %c0_25, %c0_26] : memref<8x64x32xbf16, #tpu.memory_space<vmem>>, vector<1x64x32xbf16>
    %47 = vector.shape_cast %46 : vector<1x64x32xbf16> to vector<64x32xbf16>
    %c1_27 = arith.constant 1 : index
    %c0_28 = arith.constant 0 : index
    %c0_29 = arith.constant 0 : index
    %48 = vector.load %arg4[%c1_27, %c0_28, %c0_29] : memref<8x32x64xbf16, #tpu.memory_space<vmem>>, vector<1x32x64xbf16>
    %49 = vector.shape_cast %48 : vector<1x32x64xbf16> to vector<32x64xbf16>
    %cst_30 = arith.constant dense<0.000000e+00> : vector<2x64xf32>
    %50 = tpu.matmul %45, %47, %cst_30 {dimension_numbers = #tpu.dot_dimension_numbers<[1], [1], [0], [0], [0, 0, 1, 0], [], []>} : vector<2x32xbf16>, vector<64x32xbf16>, vector<2x64xf32> -> vector<2x64xf32>
    %51 = vector.extract_strided_slice %1 {offsets = [1, 0], sizes = [1, 64], strides = [1, 1]} : vector<8x64xf32> to vector<1x64xf32>
    %52 = vector.broadcast %51 : vector<1x64xf32> to vector<2x64xf32>
    %53 = arith.addf %50, %52 : vector<2x64xf32>
    %54 = arith.truncf %53 : vector<2x64xf32> to vector<2x64xbf16>
    %cst_31 = arith.constant dense<0.000000e+00> : vector<2x32xf32>
    %55 = tpu.matmul %54, %49, %cst_31 {dimension_numbers = #tpu.dot_dimension_numbers<[1], [1], [0], [0], [0, 0, 1, 0], [], []>} : vector<2x64xbf16>, vector<32x64xbf16>, vector<2x32xf32> -> vector<2x32xf32>
    %56 = vector.extract_strided_slice %2 {offsets = [1, 0], sizes = [1, 32], strides = [1, 1]} : vector<8x32xf32> to vector<1x32xf32>
    %57 = vector.broadcast %56 : vector<1x32xf32> to vector<2x32xf32>
    %58 = arith.addf %55, %57 : vector<2x32xf32>
    %59 = arith.extf %45 : vector<2x32xbf16> to vector<2x32xf32>
    %60 = arith.addf %58, %59 : vector<2x32xf32>
    %cst_32 = arith.constant dense<0.000000e+00> : vector<2xf32>
    %61 = vector.multi_reduction <add>, %60, %cst_32 [1] : vector<2x32xf32> to vector<2xf32>
    %62 = vector.shape_cast %61 : vector<2xf32> to vector<2x1xf32>
    %cst_33 = arith.constant 3.200000e+01 : f32
    %63 = vector.broadcast %cst_33 : f32 to vector<2x1xf32>
    %64 = arith.divf %62, %63 : vector<2x1xf32>
    %65 = vector.broadcast %64 : vector<2x1xf32> to vector<2x32xf32>
    %66 = arith.subf %60, %65 : vector<2x32xf32>
    %67 = arith.mulf %66, %66 : vector<2x32xf32>
    %cst_34 = arith.constant dense<0.000000e+00> : vector<2xf32>
    %68 = vector.multi_reduction <add>, %67, %cst_34 [1] : vector<2x32xf32> to vector<2xf32>
    %69 = vector.shape_cast %68 : vector<2xf32> to vector<2x1xf32>
    %cst_35 = arith.constant 3.200000e+01 : f32
    %70 = vector.broadcast %cst_35 : f32 to vector<2x1xf32>
    %71 = arith.divf %69, %70 : vector<2x1xf32>
    %cst_36 = arith.constant 9.99999974E-6 : f32
    %72 = vector.broadcast %cst_36 : f32 to vector<2x1xf32>
    %73 = arith.addf %71, %72 : vector<2x1xf32>
    %74 = math.rsqrt %73 : vector<2x1xf32>
    %75 = vector.broadcast %74 : vector<2x1xf32> to vector<2x32xf32>
    %76 = arith.mulf %66, %75 : vector<2x32xf32>
    %77 = vector.broadcast %3 : vector<1x32xf32> to vector<2x32xf32>
    %78 = arith.mulf %76, %77 : vector<2x32xf32>
    %79 = vector.broadcast %4 : vector<1x32xf32> to vector<2x32xf32>
    %80 = arith.addf %78, %79 : vector<2x32xf32>
    %81 = vector.shape_cast %80 : vector<2x32xf32> to vector<2x1x32xf32>
    %c0_37 = arith.constant 0 : index
    %c1_38 = arith.constant 1 : index
    %c0_39 = arith.constant 0 : index
    %82 = vector.load %arg8[%c0_37, %c1_38, %c0_39] : memref<2x8x32xf32, #tpu.memory_space<vmem>>, vector<2x1x32xf32>
    tpu.vector_store %arg8[%c0_37, %c1_38, %c0_39], %81 {strides = array<i32>} : memref<2x8x32xf32, #tpu.memory_space<vmem>>, vector<2x1x32xf32>,
    %83 = vector.extract_strided_slice %0 {offsets = [0, 2, 0], sizes = [2, 1, 32], strides = [1, 1, 1]} : vector<2x8x32xbf16> to vector<2x1x32xbf16>
    %84 = vector.shape_cast %83 : vector<2x1x32xbf16> to vector<2x32xbf16>
    %c2 = arith.constant 2 : index
    %c0_40 = arith.constant 0 : index
    %c0_41 = arith.constant 0 : index
    %85 = vector.load %arg2[%c2, %c0_40, %c0_41] : memref<8x64x32xbf16, #tpu.memory_space<vmem>>, vector<1x64x32xbf16>
    %86 = vector.shape_cast %85 : vector<1x64x32xbf16> to vector<64x32xbf16>
    %c2_42 = arith.constant 2 : index
    %c0_43 = arith.constant 0 : index
    %c0_44 = arith.constant 0 : index
    %87 = vector.load %arg4[%c2_42, %c0_43, %c0_44] : memref<8x32x64xbf16, #tpu.memory_space<vmem>>, vector<1x32x64xbf16>
    %88 = vector.shape_cast %87 : vector<1x32x64xbf16> to vector<32x64xbf16>
    %cst_45 = arith.constant dense<0.000000e+00> : vector<2x64xf32>
    %89 = tpu.matmul %84, %86, %cst_45 {dimension_numbers = #tpu.dot_dimension_numbers<[1], [1], [0], [0], [0, 0, 1, 0], [], []>} : vector<2x32xbf16>, vector<64x32xbf16>, vector<2x64xf32> -> vector<2x64xf32>
    %90 = vector.extract_strided_slice %1 {offsets = [2, 0], sizes = [1, 64], strides = [1, 1]} : vector<8x64xf32> to vector<1x64xf32>
    %91 = vector.broadcast %90 : vector<1x64xf32> to vector<2x64xf32>
    %92 = arith.addf %89, %91 : vector<2x64xf32>
    %93 = arith.truncf %92 : vector<2x64xf32> to vector<2x64xbf16>
    %cst_46 = arith.constant dense<0.000000e+00> : vector<2x32xf32>
    %94 = tpu.matmul %93, %88, %cst_46 {dimension_numbers = #tpu.dot_dimension_numbers<[1], [1], [0], [0], [0, 0, 1, 0], [], []>} : vector<2x64xbf16>, vector<32x64xbf16>, vector<2x32xf32> -> vector<2x32xf32>
    %95 = vector.extract_strided_slice %2 {offsets = [2, 0], sizes = [1, 32], strides = [1, 1]} : vector<8x32xf32> to vector<1x32xf32>
    %96 = vector.broadcast %95 : vector<1x32xf32> to vector<2x32xf32>
    %97 = arith.addf %94, %96 : vector<2x32xf32>
    %98 = arith.extf %84 : vector<2x32xbf16> to vector<2x32xf32>
    %99 = arith.addf %97, %98 : vector<2x32xf32>
    %cst_47 = arith.constant dense<0.000000e+00> : vector<2xf32>
    %100 = vector.multi_reduction <add>, %99, %cst_47 [1] : vector<2x32xf32> to vector<2xf32>
    %101 = vector.shape_cast %100 : vector<2xf32> to vector<2x1xf32>
    %cst_48 = arith.constant 3.200000e+01 : f32
    %102 = vector.broadcast %cst_48 : f32 to vector<2x1xf32>
    %103 = arith.divf %101, %102 : vector<2x1xf32>
    %104 = vector.broadcast %103 : vector<2x1xf32> to vector<2x32xf32>
    %105 = arith.subf %99, %104 : vector<2x32xf32>
    %106 = arith.mulf %105, %105 : vector<2x32xf32>
    %cst_49 = arith.constant dense<0.000000e+00> : vector<2xf32>
    %107 = vector.multi_reduction <add>, %106, %cst_49 [1] : vector<2x32xf32> to vector<2xf32>
    %108 = vector.shape_cast %107 : vector<2xf32> to vector<2x1xf32>
    %cst_50 = arith.constant 3.200000e+01 : f32
    %109 = vector.broadcast %cst_50 : f32 to vector<2x1xf32>
    %110 = arith.divf %108, %109 : vector<2x1xf32>
    %cst_51 = arith.constant 9.99999974E-6 : f32
    %111 = vector.broadcast %cst_51 : f32 to vector<2x1xf32>
    %112 = arith.addf %110, %111 : vector<2x1xf32>
    %113 = math.rsqrt %112 : vector<2x1xf32>
    %114 = vector.broadcast %113 : vector<2x1xf32> to vector<2x32xf32>
    %115 = arith.mulf %105, %114 : vector<2x32xf32>
    %116 = vector.broadcast %3 : vector<1x32xf32> to vector<2x32xf32>
    %117 = arith.mulf %115, %116 : vector<2x32xf32>
    %118 = vector.broadcast %4 : vector<1x32xf32> to vector<2x32xf32>
    %119 = arith.addf %117, %118 : vector<2x32xf32>
    %120 = vector.shape_cast %119 : vector<2x32xf32> to vector<2x1x32xf32>
    %c0_52 = arith.constant 0 : index
    %c2_53 = arith.constant 2 : index
    %c0_54 = arith.constant 0 : index
    %121 = vector.load %arg8[%c0_52, %c2_53, %c0_54] : memref<2x8x32xf32, #tpu.memory_space<vmem>>, vector<2x1x32xf32>
    tpu.vector_store %arg8[%c0_52, %c2_53, %c0_54], %120 {strides = array<i32>} : memref<2x8x32xf32, #tpu.memory_space<vmem>>, vector<2x1x32xf32>,
    %122 = vector.extract_strided_slice %0 {offsets = [0, 3, 0], sizes = [2, 1, 32], strides = [1, 1, 1]} : vector<2x8x32xbf16> to vector<2x1x32xbf16>
    %123 = vector.shape_cast %122 : vector<2x1x32xbf16> to vector<2x32xbf16>
    %c3 = arith.constant 3 : index
    %c0_55 = arith.constant 0 : index
    %c0_56 = arith.constant 0 : index
    %124 = vector.load %arg2[%c3, %c0_55, %c0_56] : memref<8x64x32xbf16, #tpu.memory_space<vmem>>, vector<1x64x32xbf16>
    %125 = vector.shape_cast %124 : vector<1x64x32xbf16> to vector<64x32xbf16>
    %c3_57 = arith.constant 3 : index
    %c0_58 = arith.constant 0 : index
    %c0_59 = arith.constant 0 : index
    %126 = vector.load %arg4[%c3_57, %c0_58, %c0_59] : memref<8x32x64xbf16, #tpu.memory_space<vmem>>, vector<1x32x64xbf16>
    %127 = vector.shape_cast %126 : vector<1x32x64xbf16> to vector<32x64xbf16>
    %cst_60 = arith.constant dense<0.000000e+00> : vector<2x64xf32>
    %128 = tpu.matmul %123, %125, %cst_60 {dimension_numbers = #tpu.dot_dimension_numbers<[1], [1], [0], [0], [0, 0, 1, 0], [], []>} : vector<2x32xbf16>, vector<64x32xbf16>, vector<2x64xf32> -> vector<2x64xf32>
    %129 = vector.extract_strided_slice %1 {offsets = [3, 0], sizes = [1, 64], strides = [1, 1]} : vector<8x64xf32> to vector<1x64xf32>
    %130 = vector.broadcast %129 : vector<1x64xf32> to vector<2x64xf32>
    %131 = arith.addf %128, %130 : vector<2x64xf32>
    %132 = arith.truncf %131 : vector<2x64xf32> to vector<2x64xbf16>
    %cst_61 = arith.constant dense<0.000000e+00> : vector<2x32xf32>
    %133 = tpu.matmul %132, %127, %cst_61 {dimension_numbers = #tpu.dot_dimension_numbers<[1], [1], [0], [0], [0, 0, 1, 0], [], []>} : vector<2x64xbf16>, vector<32x64xbf16>, vector<2x32xf32> -> vector<2x32xf32>
    %134 = vector.extract_strided_slice %2 {offsets = [3, 0], sizes = [1, 32], strides = [1, 1]} : vector<8x32xf32> to vector<1x32xf32>
    %135 = vector.broadcast %134 : vector<1x32xf32> to vector<2x32xf32>
    %136 = arith.addf %133, %135 : vector<2x32xf32>
    %137 = arith.extf %123 : vector<2x32xbf16> to vector<2x32xf32>
    %138 = arith.addf %136, %137 : vector<2x32xf32>
    %cst_62 = arith.constant dense<0.000000e+00> : vector<2xf32>
    %139 = vector.multi_reduction <add>, %138, %cst_62 [1] : vector<2x32xf32> to vector<2xf32>
    %140 = vector.shape_cast %139 : vector<2xf32> to vector<2x1xf32>
    %cst_63 = arith.constant 3.200000e+01 : f32
    %141 = vector.broadcast %cst_63 : f32 to vector<2x1xf32>
    %142 = arith.divf %140, %141 : vector<2x1xf32>
    %143 = vector.broadcast %142 : vector<2x1xf32> to vector<2x32xf32>
    %144 = arith.subf %138, %143 : vector<2x32xf32>
    %145 = arith.mulf %144, %144 : vector<2x32xf32>
    %cst_64 = arith.constant dense<0.000000e+00> : vector<2xf32>
    %146 = vector.multi_reduction <add>, %145, %cst_64 [1] : vector<2x32xf32> to vector<2xf32>
    %147 = vector.shape_cast %146 : vector<2xf32> to vector<2x1xf32>
    %cst_65 = arith.constant 3.200000e+01 : f32
    %148 = vector.broadcast %cst_65 : f32 to vector<2x1xf32>
    %149 = arith.divf %147, %148 : vector<2x1xf32>
    %cst_66 = arith.constant 9.99999974E-6 : f32
    %150 = vector.broadcast %cst_66 : f32 to vector<2x1xf32>
    %151 = arith.addf %149, %150 : vector<2x1xf32>
    %152 = math.rsqrt %151 : vector<2x1xf32>
    %153 = vector.broadcast %152 : vector<2x1xf32> to vector<2x32xf32>
    %154 = arith.mulf %144, %153 : vector<2x32xf32>
    %155 = vector.broadcast %3 : vector<1x32xf32> to vector<2x32xf32>
    %156 = arith.mulf %154, %155 : vector<2x32xf32>
    %157 = vector.broadcast %4 : vector<1x32xf32> to vector<2x32xf32>
    %158 = arith.addf %156, %157 : vector<2x32xf32>
    %159 = vector.shape_cast %158 : vector<2x32xf32> to vector<2x1x32xf32>
    %c0_67 = arith.constant 0 : index
    %c3_68 = arith.constant 3 : index
    %c0_69 = arith.constant 0 : index
    %160 = vector.load %arg8[%c0_67, %c3_68, %c0_69] : memref<2x8x32xf32, #tpu.memory_space<vmem>>, vector<2x1x32xf32>
    tpu.vector_store %arg8[%c0_67, %c3_68, %c0_69], %159 {strides = array<i32>} : memref<2x8x32xf32, #tpu.memory_space<vmem>>, vector<2x1x32xf32>,
    %161 = vector.extract_strided_slice %0 {offsets = [0, 4, 0], sizes = [2, 1, 32], strides = [1, 1, 1]} : vector<2x8x32xbf16> to vector<2x1x32xbf16>
    %162 = vector.shape_cast %161 : vector<2x1x32xbf16> to vector<2x32xbf16>
    %c4 = arith.constant 4 : index
    %c0_70 = arith.constant 0 : index
    %c0_71 = arith.constant 0 : index
    %163 = vector.load %arg2[%c4, %c0_70, %c0_71] : memref<8x64x32xbf16, #tpu.memory_space<vmem>>, vector<1x64x32xbf16>
    %164 = vector.shape_cast %163 : vector<1x64x32xbf16> to vector<64x32xbf16>
    %c4_72 = arith.constant 4 : index
    %c0_73 = arith.constant 0 : index
    %c0_74 = arith.constant 0 : index
    %165 = vector.load %arg4[%c4_72, %c0_73, %c0_74] : memref<8x32x64xbf16, #tpu.memory_space<vmem>>, vector<1x32x64xbf16>
    %166 = vector.shape_cast %165 : vector<1x32x64xbf16> to vector<32x64xbf16>
    %cst_75 = arith.constant dense<0.000000e+00> : vector<2x64xf32>
    %167 = tpu.matmul %162, %164, %cst_75 {dimension_numbers = #tpu.dot_dimension_numbers<[1], [1], [0], [0], [0, 0, 1, 0], [], []>} : vector<2x32xbf16>, vector<64x32xbf16>, vector<2x64xf32> -> vector<2x64xf32>
    %168 = vector.extract_strided_slice %1 {offsets = [4, 0], sizes = [1, 64], strides = [1, 1]} : vector<8x64xf32> to vector<1x64xf32>
    %169 = vector.broadcast %168 : vector<1x64xf32> to vector<2x64xf32>
    %170 = arith.addf %167, %169 : vector<2x64xf32>
    %171 = arith.truncf %170 : vector<2x64xf32> to vector<2x64xbf16>
    %cst_76 = arith.constant dense<0.000000e+00> : vector<2x32xf32>
    %172 = tpu.matmul %171, %166, %cst_76 {dimension_numbers = #tpu.dot_dimension_numbers<[1], [1], [0], [0], [0, 0, 1, 0], [], []>} : vector<2x64xbf16>, vector<32x64xbf16>, vector<2x32xf32> -> vector<2x32xf32>
    %173 = vector.extract_strided_slice %2 {offsets = [4, 0], sizes = [1, 32], strides = [1, 1]} : vector<8x32xf32> to vector<1x32xf32>
    %174 = vector.broadcast %173 : vector<1x32xf32> to vector<2x32xf32>
    %175 = arith.addf %172, %174 : vector<2x32xf32>
    %176 = arith.extf %162 : vector<2x32xbf16> to vector<2x32xf32>
    %177 = arith.addf %175, %176 : vector<2x32xf32>
    %cst_77 = arith.constant dense<0.000000e+00> : vector<2xf32>
    %178 = vector.multi_reduction <add>, %177, %cst_77 [1] : vector<2x32xf32> to vector<2xf32>
    %179 = vector.shape_cast %178 : vector<2xf32> to vector<2x1xf32>
    %cst_78 = arith.constant 3.200000e+01 : f32
    %180 = vector.broadcast %cst_78 : f32 to vector<2x1xf32>
    %181 = arith.divf %179, %180 : vector<2x1xf32>
    %182 = vector.broadcast %181 : vector<2x1xf32> to vector<2x32xf32>
    %183 = arith.subf %177, %182 : vector<2x32xf32>
    %184 = arith.mulf %183, %183 : vector<2x32xf32>
    %cst_79 = arith.constant dense<0.000000e+00> : vector<2xf32>
    %185 = vector.multi_reduction <add>, %184, %cst_79 [1] : vector<2x32xf32> to vector<2xf32>
    %186 = vector.shape_cast %185 : vector<2xf32> to vector<2x1xf32>
    %cst_80 = arith.constant 3.200000e+01 : f32
    %187 = vector.broadcast %cst_80 : f32 to vector<2x1xf32>
    %188 = arith.divf %186, %187 : vector<2x1xf32>
    %cst_81 = arith.constant 9.99999974E-6 : f32
    %189 = vector.broadcast %cst_81 : f32 to vector<2x1xf32>
    %190 = arith.addf %188, %189 : vector<2x1xf32>
    %191 = math.rsqrt %190 : vector<2x1xf32>
    %192 = vector.broadcast %191 : vector<2x1xf32> to vector<2x32xf32>
    %193 = arith.mulf %183, %192 : vector<2x32xf32>
    %194 = vector.broadcast %3 : vector<1x32xf32> to vector<2x32xf32>
    %195 = arith.mulf %193, %194 : vector<2x32xf32>
    %196 = vector.broadcast %4 : vector<1x32xf32> to vector<2x32xf32>
    %197 = arith.addf %195, %196 : vector<2x32xf32>
    %198 = vector.shape_cast %197 : vector<2x32xf32> to vector<2x1x32xf32>
    %c0_82 = arith.constant 0 : index
    %c4_83 = arith.constant 4 : index
    %c0_84 = arith.constant 0 : index
    %199 = vector.load %arg8[%c0_82, %c4_83, %c0_84] : memref<2x8x32xf32, #tpu.memory_space<vmem>>, vector<2x1x32xf32>
    tpu.vector_store %arg8[%c0_82, %c4_83, %c0_84], %198 {strides = array<i32>} : memref<2x8x32xf32, #tpu.memory_space<vmem>>, vector<2x1x32xf32>,
    %200 = vector.extract_strided_slice %0 {offsets = [0, 5, 0], sizes = [2, 1, 32], strides = [1, 1, 1]} : vector<2x8x32xbf16> to vector<2x1x32xbf16>
    %201 = vector.shape_cast %200 : vector<2x1x32xbf16> to vector<2x32xbf16>
    %c5 = arith.constant 5 : index
    %c0_85 = arith.constant 0 : index
    %c0_86 = arith.constant 0 : index
    %202 = vector.load %arg2[%c5, %c0_85, %c0_86] : memref<8x64x32xbf16, #tpu.memory_space<vmem>>, vector<1x64x32xbf16>
    %203 = vector.shape_cast %202 : vector<1x64x32xbf16> to vector<64x32xbf16>
    %c5_87 = arith.constant 5 : index
    %c0_88 = arith.constant 0 : index
    %c0_89 = arith.constant 0 : index
    %204 = vector.load %arg4[%c5_87, %c0_88, %c0_89] : memref<8x32x64xbf16, #tpu.memory_space<vmem>>, vector<1x32x64xbf16>
    %205 = vector.shape_cast %204 : vector<1x32x64xbf16> to vector<32x64xbf16>
    %cst_90 = arith.constant dense<0.000000e+00> : vector<2x64xf32>
    %206 = tpu.matmul %201, %203, %cst_90 {dimension_numbers = #tpu.dot_dimension_numbers<[1], [1], [0], [0], [0, 0, 1, 0], [], []>} : vector<2x32xbf16>, vector<64x32xbf16>, vector<2x64xf32> -> vector<2x64xf32>
    %207 = vector.extract_strided_slice %1 {offsets = [5, 0], sizes = [1, 64], strides = [1, 1]} : vector<8x64xf32> to vector<1x64xf32>
    %208 = vector.broadcast %207 : vector<1x64xf32> to vector<2x64xf32>
    %209 = arith.addf %206, %208 : vector<2x64xf32>
    %210 = arith.truncf %209 : vector<2x64xf32> to vector<2x64xbf16>
    %cst_91 = arith.constant dense<0.000000e+00> : vector<2x32xf32>
    %211 = tpu.matmul %210, %205, %cst_91 {dimension_numbers = #tpu.dot_dimension_numbers<[1], [1], [0], [0], [0, 0, 1, 0], [], []>} : vector<2x64xbf16>, vector<32x64xbf16>, vector<2x32xf32> -> vector<2x32xf32>
    %212 = vector.extract_strided_slice %2 {offsets = [5, 0], sizes = [1, 32], strides = [1, 1]} : vector<8x32xf32> to vector<1x32xf32>
    %213 = vector.broadcast %212 : vector<1x32xf32> to vector<2x32xf32>
    %214 = arith.addf %211, %213 : vector<2x32xf32>
    %215 = arith.extf %201 : vector<2x32xbf16> to vector<2x32xf32>
    %216 = arith.addf %214, %215 : vector<2x32xf32>
    %cst_92 = arith.constant dense<0.000000e+00> : vector<2xf32>
    %217 = vector.multi_reduction <add>, %216, %cst_92 [1] : vector<2x32xf32> to vector<2xf32>
    %218 = vector.shape_cast %217 : vector<2xf32> to vector<2x1xf32>
    %cst_93 = arith.constant 3.200000e+01 : f32
    %219 = vector.broadcast %cst_93 : f32 to vector<2x1xf32>
    %220 = arith.divf %218, %219 : vector<2x1xf32>
    %221 = vector.broadcast %220 : vector<2x1xf32> to vector<2x32xf32>
    %222 = arith.subf %216, %221 : vector<2x32xf32>
    %223 = arith.mulf %222, %222 : vector<2x32xf32>
    %cst_94 = arith.constant dense<0.000000e+00> : vector<2xf32>
    %224 = vector.multi_reduction <add>, %223, %cst_94 [1] : vector<2x32xf32> to vector<2xf32>
    %225 = vector.shape_cast %224 : vector<2xf32> to vector<2x1xf32>
    %cst_95 = arith.constant 3.200000e+01 : f32
    %226 = vector.broadcast %cst_95 : f32 to vector<2x1xf32>
    %227 = arith.divf %225, %226 : vector<2x1xf32>
    %cst_96 = arith.constant 9.99999974E-6 : f32
    %228 = vector.broadcast %cst_96 : f32 to vector<2x1xf32>
    %229 = arith.addf %227, %228 : vector<2x1xf32>
    %230 = math.rsqrt %229 : vector<2x1xf32>
    %231 = vector.broadcast %230 : vector<2x1xf32> to vector<2x32xf32>
    %232 = arith.mulf %222, %231 : vector<2x32xf32>
    %233 = vector.broadcast %3 : vector<1x32xf32> to vector<2x32xf32>
    %234 = arith.mulf %232, %233 : vector<2x32xf32>
    %235 = vector.broadcast %4 : vector<1x32xf32> to vector<2x32xf32>
    %236 = arith.addf %234, %235 : vector<2x32xf32>
    %237 = vector.shape_cast %236 : vector<2x32xf32> to vector<2x1x32xf32>
    %c0_97 = arith.constant 0 : index
    %c5_98 = arith.constant 5 : index
    %c0_99 = arith.constant 0 : index
    %238 = vector.load %arg8[%c0_97, %c5_98, %c0_99] : memref<2x8x32xf32, #tpu.memory_space<vmem>>, vector<2x1x32xf32>
    tpu.vector_store %arg8[%c0_97, %c5_98, %c0_99], %237 {strides = array<i32>} : memref<2x8x32xf32, #tpu.memory_space<vmem>>, vector<2x1x32xf32>,
    %239 = vector.extract_strided_slice %0 {offsets = [0, 6, 0], sizes = [2, 1, 32], strides = [1, 1, 1]} : vector<2x8x32xbf16> to vector<2x1x32xbf16>
    %240 = vector.shape_cast %239 : vector<2x1x32xbf16> to vector<2x32xbf16>
    %c6 = arith.constant 6 : index
    %c0_100 = arith.constant 0 : index
    %c0_101 = arith.constant 0 : index
    %241 = vector.load %arg2[%c6, %c0_100, %c0_101] : memref<8x64x32xbf16, #tpu.memory_space<vmem>>, vector<1x64x32xbf16>
    %242 = vector.shape_cast %241 : vector<1x64x32xbf16> to vector<64x32xbf16>
    %c6_102 = arith.constant 6 : index
    %c0_103 = arith.constant 0 : index
    %c0_104 = arith.constant 0 : index
    %243 = vector.load %arg4[%c6_102, %c0_103, %c0_104] : memref<8x32x64xbf16, #tpu.memory_space<vmem>>, vector<1x32x64xbf16>
    %244 = vector.shape_cast %243 : vector<1x32x64xbf16> to vector<32x64xbf16>
    %cst_105 = arith.constant dense<0.000000e+00> : vector<2x64xf32>
    %245 = tpu.matmul %240, %242, %cst_105 {dimension_numbers = #tpu.dot_dimension_numbers<[1], [1], [0], [0], [0, 0, 1, 0], [], []>} : vector<2x32xbf16>, vector<64x32xbf16>, vector<2x64xf32> -> vector<2x64xf32>
    %246 = vector.extract_strided_slice %1 {offsets = [6, 0], sizes = [1, 64], strides = [1, 1]} : vector<8x64xf32> to vector<1x64xf32>
    %247 = vector.broadcast %246 : vector<1x64xf32> to vector<2x64xf32>
    %248 = arith.addf %245, %247 : vector<2x64xf32>
    %249 = arith.truncf %248 : vector<2x64xf32> to vector<2x64xbf16>
    %cst_106 = arith.constant dense<0.000000e+00> : vector<2x32xf32>
    %250 = tpu.matmul %249, %244, %cst_106 {dimension_numbers = #tpu.dot_dimension_numbers<[1], [1], [0], [0], [0, 0, 1, 0], [], []>} : vector<2x64xbf16>, vector<32x64xbf16>, vector<2x32xf32> -> vector<2x32xf32>
    %251 = vector.extract_strided_slice %2 {offsets = [6, 0], sizes = [1, 32], strides = [1, 1]} : vector<8x32xf32> to vector<1x32xf32>
    %252 = vector.broadcast %251 : vector<1x32xf32> to vector<2x32xf32>
    %253 = arith.addf %250, %252 : vector<2x32xf32>
    %254 = arith.extf %240 : vector<2x32xbf16> to vector<2x32xf32>
    %255 = arith.addf %253, %254 : vector<2x32xf32>
    %cst_107 = arith.constant dense<0.000000e+00> : vector<2xf32>
    %256 = vector.multi_reduction <add>, %255, %cst_107 [1] : vector<2x32xf32> to vector<2xf32>
    %257 = vector.shape_cast %256 : vector<2xf32> to vector<2x1xf32>
    %cst_108 = arith.constant 3.200000e+01 : f32
    %258 = vector.broadcast %cst_108 : f32 to vector<2x1xf32>
    %259 = arith.divf %257, %258 : vector<2x1xf32>
    %260 = vector.broadcast %259 : vector<2x1xf32> to vector<2x32xf32>
    %261 = arith.subf %255, %260 : vector<2x32xf32>
    %262 = arith.mulf %261, %261 : vector<2x32xf32>
    %cst_109 = arith.constant dense<0.000000e+00> : vector<2xf32>
    %263 = vector.multi_reduction <add>, %262, %cst_109 [1] : vector<2x32xf32> to vector<2xf32>
    %264 = vector.shape_cast %263 : vector<2xf32> to vector<2x1xf32>
    %cst_110 = arith.constant 3.200000e+01 : f32
    %265 = vector.broadcast %cst_110 : f32 to vector<2x1xf32>
    %266 = arith.divf %264, %265 : vector<2x1xf32>
    %cst_111 = arith.constant 9.99999974E-6 : f32
    %267 = vector.broadcast %cst_111 : f32 to vector<2x1xf32>
    %268 = arith.addf %266, %267 : vector<2x1xf32>
    %269 = math.rsqrt %268 : vector<2x1xf32>
    %270 = vector.broadcast %269 : vector<2x1xf32> to vector<2x32xf32>
    %271 = arith.mulf %261, %270 : vector<2x32xf32>
    %272 = vector.broadcast %3 : vector<1x32xf32> to vector<2x32xf32>
    %273 = arith.mulf %271, %272 : vector<2x32xf32>
    %274 = vector.broadcast %4 : vector<1x32xf32> to vector<2x32xf32>
    %275 = arith.addf %273, %274 : vector<2x32xf32>
    %276 = vector.shape_cast %275 : vector<2x32xf32> to vector<2x1x32xf32>
    %c0_112 = arith.constant 0 : index
    %c6_113 = arith.constant 6 : index
    %c0_114 = arith.constant 0 : index
    %277 = vector.load %arg8[%c0_112, %c6_113, %c0_114] : memref<2x8x32xf32, #tpu.memory_space<vmem>>, vector<2x1x32xf32>
    tpu.vector_store %arg8[%c0_112, %c6_113, %c0_114], %276 {strides = array<i32>} : memref<2x8x32xf32, #tpu.memory_space<vmem>>, vector<2x1x32xf32>,
    %278 = vector.extract_strided_slice %0 {offsets = [0, 7, 0], sizes = [2, 1, 32], strides = [1, 1, 1]} : vector<2x8x32xbf16> to vector<2x1x32xbf16>
    %279 = vector.shape_cast %278 : vector<2x1x32xbf16> to vector<2x32xbf16>
    %c7 = arith.constant 7 : index
    %c0_115 = arith.constant 0 : index
    %c0_116 = arith.constant 0 : index
    %280 = vector.load %arg2[%c7, %c0_115, %c0_116] : memref<8x64x32xbf16, #tpu.memory_space<vmem>>, vector<1x64x32xbf16>
    %281 = vector.shape_cast %280 : vector<1x64x32xbf16> to vector<64x32xbf16>
    %c7_117 = arith.constant 7 : index
    %c0_118 = arith.constant 0 : index
    %c0_119 = arith.constant 0 : index
    %282 = vector.load %arg4[%c7_117, %c0_118, %c0_119] : memref<8x32x64xbf16, #tpu.memory_space<vmem>>, vector<1x32x64xbf16>
    %283 = vector.shape_cast %282 : vector<1x32x64xbf16> to vector<32x64xbf16>
    %cst_120 = arith.constant dense<0.000000e+00> : vector<2x64xf32>
    %284 = tpu.matmul %279, %281, %cst_120 {dimension_numbers = #tpu.dot_dimension_numbers<[1], [1], [0], [0], [0, 0, 1, 0], [], []>} : vector<2x32xbf16>, vector<64x32xbf16>, vector<2x64xf32> -> vector<2x64xf32>
    %285 = vector.extract_strided_slice %1 {offsets = [7, 0], sizes = [1, 64], strides = [1, 1]} : vector<8x64xf32> to vector<1x64xf32>
    %286 = vector.broadcast %285 : vector<1x64xf32> to vector<2x64xf32>
    %287 = arith.addf %284, %286 : vector<2x64xf32>
    %288 = arith.truncf %287 : vector<2x64xf32> to vector<2x64xbf16>
    %cst_121 = arith.constant dense<0.000000e+00> : vector<2x32xf32>
    %289 = tpu.matmul %288, %283, %cst_121 {dimension_numbers = #tpu.dot_dimension_numbers<[1], [1], [0], [0], [0, 0, 1, 0], [], []>} : vector<2x64xbf16>, vector<32x64xbf16>, vector<2x32xf32> -> vector<2x32xf32>
    %290 = vector.extract_strided_slice %2 {offsets = [7, 0], sizes = [1, 32], strides = [1, 1]} : vector<8x32xf32> to vector<1x32xf32>
    %291 = vector.broadcast %290 : vector<1x32xf32> to vector<2x32xf32>
    %292 = arith.addf %289, %291 : vector<2x32xf32>
    %293 = arith.extf %279 : vector<2x32xbf16> to vector<2x32xf32>
    %294 = arith.addf %292, %293 : vector<2x32xf32>
    %cst_122 = arith.constant dense<0.000000e+00> : vector<2xf32>
    %295 = vector.multi_reduction <add>, %294, %cst_122 [1] : vector<2x32xf32> to vector<2xf32>
    %296 = vector.shape_cast %295 : vector<2xf32> to vector<2x1xf32>
    %cst_123 = arith.constant 3.200000e+01 : f32
    %297 = vector.broadcast %cst_123 : f32 to vector<2x1xf32>
    %298 = arith.divf %296, %297 : vector<2x1xf32>
    %299 = vector.broadcast %298 : vector<2x1xf32> to vector<2x32xf32>
    %300 = arith.subf %294, %299 : vector<2x32xf32>
    %301 = arith.mulf %300, %300 : vector<2x32xf32>
    %cst_124 = arith.constant dense<0.000000e+00> : vector<2xf32>
    %302 = vector.multi_reduction <add>, %301, %cst_124 [1] : vector<2x32xf32> to vector<2xf32>
    %303 = vector.shape_cast %302 : vector<2xf32> to vector<2x1xf32>
    %cst_125 = arith.constant 3.200000e+01 : f32
    %304 = vector.broadcast %cst_125 : f32 to vector<2x1xf32>
    %305 = arith.divf %303, %304 : vector<2x1xf32>
    %cst_126 = arith.constant 9.99999974E-6 : f32
    %306 = vector.broadcast %cst_126 : f32 to vector<2x1xf32>
    %307 = arith.addf %305, %306 : vector<2x1xf32>
    %308 = math.rsqrt %307 : vector<2x1xf32>
    %309 = vector.broadcast %308 : vector<2x1xf32> to vector<2x32xf32>
    %310 = arith.mulf %300, %309 : vector<2x32xf32>
    %311 = vector.broadcast %3 : vector<1x32xf32> to vector<2x32xf32>
    %312 = arith.mulf %310, %311 : vector<2x32xf32>
    %313 = vector.broadcast %4 : vector<1x32xf32> to vector<2x32xf32>
    %314 = arith.addf %312, %313 : vector<2x32xf32>
    %315 = vector.shape_cast %314 : vector<2x32xf32> to vector<2x1x32xf32>
    %c0_127 = arith.constant 0 : index
    %c7_128 = arith.constant 7 : index
    %c0_129 = arith.constant 0 : index
    %316 = vector.load %arg8[%c0_127, %c7_128, %c0_129] : memref<2x8x32xf32, #tpu.memory_space<vmem>>, vector<2x1x32xf32>
    tpu.vector_store %arg8[%c0_127, %c7_128, %c0_129], %315 {strides = array<i32>} : memref<2x8x32xf32, #tpu.memory_space<vmem>>, vector<2x1x32xf32>,
    return
  }
  func.func @transform_0(%arg0: i32) -> (i32, i32, i32) {
    %c0_i32 = arith.constant 0 : i32
    %c0_i32_0 = arith.constant 0 : i32
    %c0_i32_1 = arith.constant 0 : i32
    return %c0_i32, %arg0, %c0_i32_0 : i32, i32, i32
  }
  func.func @transform_1(%arg0: i32) -> (i32, i32, i32) {
    %c0_i32 = arith.constant 0 : i32
    %c0_i32_0 = arith.constant 0 : i32
    %c0_i32_1 = arith.constant 0 : i32
    return %arg0, %c0_i32, %c0_i32_0 : i32, i32, i32
  }
  func.func @transform_2(%arg0: i32) -> (i32, i32) {
    %c0_i32 = arith.constant 0 : i32
    %c0_i32_0 = arith.constant 0 : i32
    return %arg0, %c0_i32 : i32, i32
  }
  func.func @transform_3(%arg0: i32) -> (i32, i32, i32) {
    %c0_i32 = arith.constant 0 : i32
    %c0_i32_0 = arith.constant 0 : i32
    %c0_i32_1 = arith.constant 0 : i32
    return %arg0, %c0_i32, %c0_i32_0 : i32, i32, i32
  }
  func.func @transform_4(%arg0: i32) -> (i32, i32) {
    %c0_i32 = arith.constant 0 : i32
    %c0_i32_0 = arith.constant 0 : i32
    return %arg0, %c0_i32 : i32, i32
  }
  func.func @transform_5(%arg0: i32) -> (i32, i32) {
    %c0_i32 = arith.constant 0 : i32
    %c0_i32_0 = arith.constant 0 : i32
    %c0_i32_1 = arith.constant 0 : i32
    return %c0_i32, %c0_i32_0 : i32, i32
  }
  func.func @transform_6(%arg0: i32) -> (i32, i32) {
    %c0_i32 = arith.constant 0 : i32
    %c0_i32_0 = arith.constant 0 : i32
    %c0_i32_1 = arith.constant 0 : i32
    return %c0_i32, %c0_i32_0 : i32, i32
  }
  func.func @transform_7(%arg0: i32) -> (i32, i32, i32) {
    %c0_i32 = arith.constant 0 : i32
    %c0_i32_0 = arith.constant 0 : i32
    %c0_i32_1 = arith.constant 0 : i32
    return %c0_i32, %arg0, %c0_i32_0 : i32, i32, i32
  }
}

</mosaic_0001>

<bundles_post_ra>
// kernel: tpu_custom_call.1
= control target key start
LH: loop header
LB: loop body
LE: loop exit
PB: predicated region body
PF: predicated region fallthrough
CT: control target
= control target key end

     0   :  { %12 = vsyncpa [#allocation4], 0  ;;  %s3411_s0 = inlined_call_operand.vmem [shape: bf16[2,16,32], index: 0, kind: input, shape index: {}]   ;;  %s3412_s1 = inlined_call_operand.vmem [shape: bf16[16,64,32], index: 1, kind: input, shape index: {}]   ;;  %s3413_s2 = inlined_call_operand.vmem [shape: f32[16,64], index: 2, kind: input, shape index: {}]   ;;  %s3414_s3 = inlined_call_operand.vmem [shape: bf16[16,32,64], index: 3, kind: input, shape index: {}]   ;;  %s3415_s4 = inlined_call_operand.vmem [shape: f32[16,32], index: 4, kind: input, shape index: {}]   ;;  %s3416_s5 = inlined_call_operand.vmem [shape: f32[1,32], index: 5, kind: input, shape index: {}]   ;;  %s3417_s6 = inlined_call_operand.vmem [shape: f32[1,32], index: 6, kind: input, shape index: {}]   ;;  %s3418_s7 = inlined_call_operand.hbm [shape: f32[2,16,32], index: 7, kind: output, shape index: {}]  }
   0x1   :  { %14 = vsyncpa [#allocation4 + $0x1], 0  ;;  %s2850_s24 = smov 0   ;;  %s2852_s25 = smov 0  }
   0x2   :  { %s2854_s26 = smov 0   ;;  %s2856_s27 = smov 0  }
   0x3 LB: > { %s2871_s28 = sadd.s32 4294967295, %s2801_s27   ;;  %s2230_s29 = sadd.s32 4294967294, %s2801_s27   ;;  %s2801_s27 = sphi %s2856_s27, %s3424_s27   ;;  %s2797_s26 = sphi %s2854_s26, %s3423_s26   ;;  %s2793_s25 = sphi %s2852_s25, %s3422_s25   ;;  %s2789_s24 = sphi %s2850_s24, %s3421_s24  }
   0x4   : > { %s2875_s30 = sadd.s32 1, %s2801_s27   ;;  %s27_s8 = sadd.s32 1, %s2797_s26 }
   0x5   : > { %s24_s9 = ssub.s32 %s2801_s27, %s2875_s30  ;;  %p34_p0 = scmp.ne.s32.totalorder %s2797_s26, %s2793_s25 }
   0x6   : > { %p25_p1 = scmp.eq.s32.totalorder %s24_s9, 0  ;;  %p35_p2 = scmp.eq.s32.totalorder %s2801_s27, 0 }
   0x7   : > { %p210_p3 = scmp.eq.s32.totalorder %s2871_s28, 1  ;;  %p215_p4 = scmp.ne.s32.totalorder %s2793_s25, %s2789_s24 }
   0x8   : > { %s2887_s10 = scalar_select %p25_p1, %s2797_s26, %s27_s8  }
   0x9   : > { %p36_p5 = por %p35_p2, %p34_p0  ;;  %p2889_p6 = por %p210_p3, %p34_p0 }
   0xa   : > { %p216_p7 = scmp.eq.s32.totalorder %s2230_s29, 1  ;;  %p2232_p9 = scmp.ge.s32.totalorder %s2801_s27, 2 }
   0xc   : > { %p2893_p8 = por %p216_p7, %p215_p4  ;;  %238 = sbr.rel (%p2232_p9) target bundleno = 26 (0x1a), region = 24 }
  0x13   : > { %241 = sbr.rel (!%p36_p5) target bundleno = 26 (0x1a), region = 28  ;;  %s243_s13 = sand.u32 (%p36_p5), 1, %s2797_s26  }
  0x14   : > { %s2234_s14 = sshll.u32 (%p36_p5), %s2801_s27, 2  ;;  %s2233_s15 = sshll.u32 (%p36_p5), %s243_s13, 3 }
  0x15   : > { %s247_s18 = scalar_lea.vmem (%p36_p5), %s3411_s0, %s2234_s14  ;;  %s245_s19 = scalar_lea.vmem (%p36_p5), [#allocation2], %s2233_s15 }
  0x16   : > { %v263_v0 = vld [vmem:[%s247_s18] sm:$0xf] (%p36_p5)  ;;  %v265_v1 = vld [vmem:[%s247_s18 + $0x8] sm:$0xf] (%p36_p5) }
  0x17   : > { %264 = vst [vmem:[%s245_s19] sm:$0xf] (%p36_p5), %v263_v0  ;;  %266 = vst [vmem:[%s245_s19 + $0x4] sm:$0xf] (%p36_p5), %v265_v1 }
  0x1a PF: > { %p2235_p10 = scmp.ge.s32.totalorder %s2801_s27, 1  ;;  %p326_p11 = scmp.lt.s32.totalorder %s2801_s27, 3 }
  0x1c   : > { %p327_p12 = pnand %p2235_p10, %p326_p11 }
  0x1d   : > { %s2238_s20 = sshll.u32 (!%p327_p12), %s2871_s28, 3  ;;  %s2909_s21 = sand.u32 (!%p327_p12), 1, %s2793_s25   ;;  %v2803_v2 = vmov (!%p327_p12), 0.0   ;;  %vm2804_vm0 = vmmov (!%p327_p12), 0   ;;  %vm461_vm1 = vcmask (!%p327_p12), 261120   ;;  %vm532_vm2 = vcmask (!%p327_p12), 523264  }
  0x1e   : > { %330 = sbr.rel (%p327_p12) target bundleno = 2576 (0xa10), region = 85  ;;  %2468 = vmatprep.subr.bf16.mxu0 (!%p327_p12), %v2803_v2  ;;  %p385_p13 = scmp.lt.s32.totalorder (!%p327_p12), %s2238_s20, 15  ;;  %2476 = vmatprep.mubr.msk.bf16.mxu0 (!%p327_p12), %vm2804_vm0, %v2803_v2  ;;  %vm438_vm3 = vcmask (!%p327_p12), 1041409   ;;  %v425_v24 = vlaneseq (!%p327_p12)  ;;  %vm590_vm4 = vcmask (!%p327_p12), 254976   ;;  %vm644_vm5 = vcmask (!%p327_p12), 253952  }
  0x1f   : > { %s2236_s22 = sshll.u32 (!%p327_p12), %s2909_s21, 3  ;;  %2480 = vmatprep.subr.bf16.mxu1 (!%p327_p12), %v2803_v2  ;;  %2484 = vmatprep.mubr.msk.bf16.mxu1 (!%p327_p12), %vm2804_vm0, %v2803_v2  ;;  %p391_p0 = scmp.lt.s32.totalorder (!%p327_p12), %s2871_s28, 1 }
  0x20   : > { %s335_s23 = scalar_lea.vmem (!%p327_p12), [#allocation2], %s2236_s22  ;;  %v2965_v25 = vshrl.u32 (!%p327_p12), %v425_v24, 7 }
  0x21   : > { %v2918_v3 = vld [vmem:[%s335_s23 + $0x4] sm:$0xf] (!%p327_p12)  ;;  %v407_v19 = vld [vmem:[%s335_s23] sm:$0xf] (!%p327_p12) }
  0x22   : > { %v2247_v4 = vcombine.low (!%p327_p12), %v2918_v3, %v2918_v3  ;;  %v2246_v20 = vcombine.low (!%p327_p12), %v407_v19, %v407_v19  ;;  %v427_v26 = vsub.s32 (!%p327_p12), 0, %v2965_v25  ;;  %v3009_v50 = vunpack.c.l.bf16 (!%p327_p12), %v2918_v3 }
  0x23   : > { %v3013_v52 = vunpack.c.l.bf16 (!%p327_p12), %v407_v19  ;;  %v663_v63 = vsub.s32 (!%p327_p12), 1, %v2965_v25 }
  0x24   : > { %v2936_v9 = vunpack.c.l.b16 (!%p327_p12), %v2247_v4  ;;  %v2952_v21 = vunpack.c.l.b16 (!%p327_p12), %v2246_v20  ;;  %v586_v53 = vrot.slane (!%p327_p12), %v3009_v50, 7 }
  0x25   : > { %s3426_s20 = smov (!%p385_p13, %s2238_s20), 15 }
  0x26   : > { %s2402_s29 = sshll.u32 %s3426_s20, 5  ;;  %s2403_s8 = sshll.u32 %s3426_s20, 4  ;;  %v437_v14 = vrot.slane %v2936_v9, 7  ;;  %v665_v42 = vrot.slane %v2952_v21, 1  ;;  %v587_v56 = vsel %vm438_vm3, %v586_v53, %v3013_v52 }
  0x27   : > { %s2923_s14 = scalar_lea.vmem %s3412_s1, %s2402_s29  ;;  %s2931_s17 = scalar_lea.vmem %s3414_s3, %s2403_s8 }
  0x28   : > { %v2673_v5 = vld [vmem:[%s2923_s14] sm:$0xff]   ;;  %v2674_v7 = vld [vmem:[%s2923_s14 + $0x8] sm:$0xff]   ;;  %v2675_v8 = vld [vmem:[%s2923_s14 + $0x10] sm:$0xff]   ;;  %v439_v22 = vsel %vm438_vm3, %v437_v14, %v2952_v21  ;;  %s2962_s18 = scalar_select %p391_p0, %s2871_s28, 1  ;;  %v666_v44 = vsel %vm438_vm3, %v2936_v9, %v665_v42 }
  0x29   : > { %v466_v6 = vsel %vm461_vm1, %v2673_v5, 0  ;;  %v2679_v10 = vld [vmem:[%s2931_s17] sm:$0xff]   ;;  %v2676_v11 = vld [vmem:[%s2923_s14 + $0x18] sm:$0xff]   ;;  %v2680_v13 = vld [vmem:[%s2931_s17 + $0x8] sm:$0xff]   ;;  %v469_v15 = vsel %vm461_vm1, %v2674_v7, 0  ;;  %v472_v16 = vsel %vm461_vm1, %v2675_v8, 0  ;;  %v440_v23 = vpack.c.b16 %v439_v22, %v439_v22 }
  0x2a   : > { %2469 = vmatpush3.bf16.xpose.msra.mxu0 %v466_v6  ;;  %v537_v12 = vsel %vm532_vm2, %v2679_v10, 0  ;;  %v475_v17 = vsel %vm461_vm1, %v2676_v11, 0  ;;  %v540_v18 = vsel %vm532_vm2, %v2680_v13, 0  ;;  %s2241_s19 = sshll.u32 %s2962_s18, 3  ;;  %v2681_v29 = vld [vmem:[%s2923_s14 + $0x20] sm:$0xff]   ;;  %v2682_v37 = vld [vmem:[%s2923_s14 + $0x28] sm:$0xff]   ;;  %v667_v45 = vpack.c.b16 %v666_v44, %v666_v44 }
  0x2b   : > { %2470 = vmatprep.subr.bf16.mxu0 %v2803_v2  ;;  %2481 = vmatpush3.bf16.xpose.msra.mxu1 %v537_v12  ;;  %s394_s23 = scalar_lea.vmem %s3413_s2, %s2241_s19  ;;  %v692_v36 = vsel %vm461_vm1, %v2681_v29, 0  ;;  %v695_v38 = vsel %vm461_vm1, %v2682_v37, 0  ;;  %v2683_v39 = vld [vmem:[%s2923_s14 + $0x30] sm:$0xff]   ;;  %v2684_v41 = vld [vmem:[%s2923_s14 + $0x38] sm:$0xff]   ;;  %s405_s9 = scalar_lea.vmem %s3415_s4, %s2241_s19  ;;  %v2687_v1 = vld [vmem:[%s2923_s14 + $0x40] sm:$0xff]  }
  0x2c   : > { %2482 = vmatprep.subr.bf16.mxu1 %v2803_v2  ;;  %v2973_v27 = vld [vmem:[%s394_s23] sm:$0xff]  ;;  %v698_v40 = vsel %vm461_vm1, %v2683_v39, 0  ;;  %v701_v43 = vsel %vm461_vm1, %v2684_v41, 0  ;;  %v2685_v46 = vld [vmem:[%s2931_s17 + $0x10] sm:$0xff]   ;;  %v2686_v48 = vld [vmem:[%s2931_s17 + $0x18] sm:$0xff]   ;;  %v899_v10 = vsel %vm461_vm1, %v2687_v1, 0 }
  0x2d   : > { %v428_v28 = vrot.slane %v2973_v27, %v427_v26  ;;  %v762_v47 = vsel %vm532_vm2, %v2685_v46, 0  ;;  %v765_v49 = vsel %vm532_vm2, %v2686_v48, 0  ;;  %v3011_v51 = vld [vmem:[%s405_s9] sm:$0xff]  ;;  %v664_v0 = vrot.slane %v2973_v27, %v663_v63  ;;  %v2688_v11 = vld [vmem:[%s2923_s14 + $0x48] sm:$0xff]   ;;  %v2689_v13 = vld [vmem:[%s2923_s14 + $0x50] sm:$0xff]   ;;  %s2399_s19 = sshll.u32 %s2871_s28, 7 }
  0x2e   : > { %v521_v54 = vrot.slane %v3011_v51, %v427_v26  ;;  %v902_v12 = vsel %vm461_vm1, %v2688_v11, 0  ;;  %v905_v14 = vsel %vm461_vm1, %v2689_v13, 0  ;;  %v2691_v22 = vld [vmem:[%s2931_s17 + $0x20] sm:$0xff]   ;;  %v2692_v24 = vld [vmem:[%s2931_s17 + $0x28] sm:$0xff]   ;;  %v747_v29 = vrot.slane %v3011_v51, %v663_v63  ;;  %v2695_v53 = vld [vmem:[%s2923_s14 + $0x70] sm:$0xff]   ;;  %s3360_s29 = scalar_lea.hbm %s3418_s7, %s2399_s19  ;;  %s2102_s28 = scalar_lea.sflag [#allocation4], %s2909_s21 }
  0x2f   : > { %v972_v26 = vsel %vm532_vm2, %v2692_v24, 0  ;;  %v2694_v48 = vld [vmem:[%s2923_s14 + $0x68] sm:$0xff]   ;;  %s2806_s9 = smov [#allocation3]  }
  0x30   : > { %s2743_s13 = sshll.u32 %s2806_s9, 4  ;;  %s2744_s13 = int_to_ptr.vmem [resolvable:$false] %s2743_s13 }
  0x32   : > { %2471 = vmatpush3.bf16.xpose.msra.mxu0 %v469_v15  ;;  %v2690_v15 = vld [vmem:[%s2923_s14 + $0x58] sm:$0xff]  }
  0x33   : > { %2472 = vmatprep.subr.bf16.mxu0 %v2803_v2  ;;  %2483 = vmatpush3.bf16.xpose.msra.mxu1 %v540_v18  ;;  %v908_v18 = vsel %vm461_vm1, %v2690_v15, 0  ;;  %v1077_v15 = vsub.s32 3, %v2965_v25 }
  0x34   : > { %2488 = vmatprep.subr.bf16.mxu1 %v2803_v2 }
  0x3a   : > { %2473 = vmatpush3.bf16.xpose.msra.mxu0 %v472_v16  ;;  %v871_v16 = vrot.slane %v2952_v21, 2 }
  0x3b   : > { %2474 = vmatprep.subr.bf16.mxu0 %v2803_v2 }
  0x42   : > { %2475 = vmatpush3.bf16.xpose.msra.mxu0 %v475_v17  ;;  %v872_v17 = vrot.slane %v2936_v9, 1 }
  0x43   : > { %2500 = vmatprep.subr.bf16.mxu0 %v2803_v2 }
  0x44   : > { %v873_v19 = vsel %vm438_vm3, %v872_v17, %v871_v16  ;;  %v1078_v16 = vrot.slane %v2973_v27, %v1077_v15  ;;  %v2699_v17 = vld [vmem:[%s2923_s14 + $0x80] sm:$0xff]  }
  0x45   : > { %v874_v20 = vpack.c.b16 %v873_v19, %v873_v19 }
  0x49   : > { %2477 = vmatmul.mubr.msk.bf16.vlgmr.msra.gmra.mrb[0].mxu0 %vm461_vm1, %v440_v23  ;;  %v969_v23 = vsel %vm532_vm2, %v2691_v22, 0 }
  0x4a   : > { %2504 = vmatprep.mubr.msk.bf16.mxu0 %vm2804_vm0, %v2803_v2  ;;  %2501 = vmatpush3.bf16.xpose.msra.mxu0 %v762_v47 }
  0x4b   : > { %2502 = vmatprep.subr.bf16.mxu0 %v2803_v2 }
  0x52   : > { %2503 = vmatpush3.bf16.xpose.msra.mxu0 %v765_v49  ;;  %v1110_v49 = vsel %vm461_vm1, %v2694_v48, 0 }
  0x53   : > { %2508 = vmatprep.subr.bf16.mxu0 %v2803_v2 }
 0x11c   : > { %v511_v30 = vpop.f32.mrb[0].mxu0 }
 0x11d   : > { %v512_v31 = vadd.f32 %v511_v30, %v428_v28  ;;  %v2478_v32 = vpop.f32.mrb[1].mxu0  ;;  %v807_v28 = vrot.slane %v3013_v52, 1 }
 0x11e   : > { %v514_v33 = vpop.f32.mrb[2].mxu0 }
 0x11f   : > { %v517_v34 = vpack.c.bf16 %v512_v31, %v512_v31  ;;  %v2479_v35 = vpop.f32.mrb[3].mxu0  ;;  %v808_v31 = vsel %vm438_vm3, %v3009_v50, %v807_v28  ;;  %v2700_v28 = vld [vmem:[%s2923_s14 + $0x88] sm:$0xff]  }
 0x121   : > { %2485 = vmatmul.mubr.msk.bf16.vlgmr.msra.gmra.mrb[0].mxu1 %vm532_vm2, %v517_v34 }
 0x122   : > { %2489 = vmatpush3.bf16.xpose.msra.mxu1 %v692_v36  ;;  %2496 = vmatprep.mubr.msk.bf16.mxu1 %vm2804_vm0, %v2803_v2 }
 0x123   : > { %2490 = vmatprep.subr.bf16.mxu1 %v2803_v2 }
 0x12a   : > { %2491 = vmatpush3.bf16.xpose.msra.mxu1 %v695_v38  ;;  %v869_v38 = vsub.s32 2, %v2965_v25 }
 0x12b   : > { %2492 = vmatprep.subr.bf16.mxu1 %v2803_v2 }
 0x12c   : > { %v870_v39 = vrot.slane %v2973_v27, %v869_v38 }
 0x132   : > { %2493 = vmatpush3.bf16.xpose.msra.mxu1 %v698_v40  ;;  %v2693_v40 = vld [vmem:[%s2923_s14 + $0x60] sm:$0xff]  }
 0x133   : > { %2494 = vmatprep.subr.bf16.mxu1 %v2803_v2  ;;  %v1107_v47 = vsel %vm461_vm1, %v2693_v40, 0 }
 0x13a   : > { %2495 = vmatpush3.bf16.xpose.msra.mxu1 %v701_v43 }
 0x13b   : > { %2520 = vmatprep.subr.bf16.mxu1 %v2803_v2 }
 0x141   : > { %2497 = vmatmul.mubr.msk.bf16.vlgmr.msra.gmra.mrb[4].mxu1 %vm461_vm1, %v667_v45 }
 0x142   : > { %2524 = vmatprep.mubr.msk.bf16.mxu1 %vm2804_vm0, %v2803_v2  ;;  %2521 = vmatpush3.bf16.xpose.msra.mxu1 %v969_v23 }
 0x143   : > { %2522 = vmatprep.subr.bf16.mxu1 %v2803_v2 }
 0x14a   : > { %2523 = vmatpush3.bf16.xpose.msra.mxu1 %v972_v26  ;;  %v1315_v26 = vsel %vm461_vm1, %v2699_v17, 0  ;;  %v2709_v17 = vld [vmem:[%s2931_s17 + $0x50] sm:$0xff]  }
 0x14b   : > { %2528 = vmatprep.subr.bf16.mxu1 %v2803_v2 }
 0x1f4   : > { %v576_v55 = vpop.f32.mrb[0].mxu1 }
 0x1f5   : > { %v577_v57 = vadd.f32 %v576_v55, %v521_v54  ;;  %v2486_v58 = vpop.f32.mrb[1].mxu1  ;;  %v1113_v54 = vsel %vm461_vm1, %v2695_v53, 0  ;;  %v2696_v55 = vld [vmem:[%s2923_s14 + $0x78] sm:$0xff]  }
 0x1f6   : > { %v579_v59 = vpop.f32.mrb[2].mxu1  ;;  %v1116_v58 = vsel %vm461_vm1, %v2696_v55, 0 }
 0x1f7   : > { %v2487_v60 = vpop.f32.mrb[3].mxu1  ;;  %v3019_v61 = vadd.f32 %v587_v56, %v577_v57  ;;  %v1079_v56 = vrot.slane %v2952_v21, 3  ;;  %v1080_v57 = vrot.slane %v2936_v9, 2 }
 0x1f9   : > { %v591_v62 = vsel %vm590_vm4, %v3019_v61, 0.0  ;;  %v1081_v59 = vsel %vm438_vm3, %v1080_v57, %v1079_v56  ;;  %v1285_v57 = vsub.s32 4, %v2965_v25 }
 0x1fa   : > { %592 = vadd.xlane.f32.xlu0 %v591_v62  ;;  %v1082_v60 = vpack.c.b16 %v1081_v59, %v1081_v59  ;;  %v2697_v62 = vld [vmem:[%s2931_s17 + $0x30] sm:$0xff]   ;;  %v2705_v59 = vld [vmem:[%s2923_s14 + $0xa0] sm:$0xff]  }
 0x1fb   : > { %v1177_v63 = vsel %vm532_vm2, %v2697_v62, 0 }
 0x214   : > { %v737_v3 = vpop.f32.mrb[4].mxu1 }
 0x215   : > { %v738_v4 = vadd.f32 %v737_v3, %v664_v0  ;;  %v2498_v5 = vpop.f32.mrb[5].mxu1  ;;  %v2698_v0 = vld [vmem:[%s2931_s17 + $0x38] sm:$0xff]   ;;  %v1014_v3 = vrot.slane %v3013_v52, 2 }
 0x216   : > { %v740_v6 = vpop.f32.mrb[6].mxu1  ;;  %v1180_v1 = vsel %vm532_vm2, %v2698_v0, 0  ;;  %v954_v5 = vrot.slane %v3011_v51, %v869_v38 }
 0x217   : > { %v743_v7 = vpack.c.bf16 %v738_v4, %v738_v4  ;;  %v2499_v8 = vpop.f32.mrb[7].mxu1  ;;  %v1015_v4 = vrot.slane %v3009_v50, 1 }
 0x219   : > { %2505 = vmatmul.mubr.msk.bf16.vlgmr.msra.gmra.mrb[4].mxu0 %vm532_vm2, %v743_v7  ;;  %v1016_v7 = vsel %vm438_vm3, %v1015_v4, %v1014_v3  ;;  %v1523_v4 = vsel %vm461_vm1, %v2705_v59, 0 }
 0x21a   : > { %2509 = vmatpush3.bf16.xpose.msra.mxu0 %v899_v10  ;;  %2516 = vmatprep.mubr.msk.bf16.mxu0 %vm2804_vm0, %v2803_v2 }
 0x21b   : > { %2510 = vmatprep.subr.bf16.mxu0 %v2803_v2 }
 0x222   : > { %2511 = vmatpush3.bf16.xpose.msra.mxu0 %v902_v12 }
 0x223   : > { %2512 = vmatprep.subr.bf16.mxu0 %v2803_v2 }
 0x22a   : > { %2513 = vmatpush3.bf16.xpose.msra.mxu0 %v905_v14 }
 0x22b   : > { %2514 = vmatprep.subr.bf16.mxu0 %v2803_v2 }
 0x232   : > { %2515 = vmatpush3.bf16.xpose.msra.mxu0 %v908_v18 }
 0x233   : > { %2540 = vmatprep.subr.bf16.mxu0 %v2803_v2 }
 0x239   : > { %2517 = vmatmul.mubr.msk.bf16.vlgmr.msra.gmra.mrb[8].mxu0 %vm461_vm1, %v874_v20 }
 0x23a   : > { %2544 = vmatprep.mubr.msk.bf16.mxu0 %vm2804_vm0, %v2803_v2  ;;  %2541 = vmatpush3.bf16.xpose.msra.mxu0 %v1177_v63 }
 0x23b   : > { %2542 = vmatprep.subr.bf16.mxu0 %v2803_v2 }
 0x242   : > { %2543 = vmatpush3.bf16.xpose.msra.mxu0 %v1180_v1 }
 0x243   : > { %2548 = vmatprep.subr.bf16.mxu0 %v2803_v2 }
 0x2ec   : > { %v801_v30 = vpop.f32.mrb[4].mxu0 }
 0x2ed   : > { %v802_v32 = vadd.f32 %v801_v30, %v747_v29  ;;  %v2506_v33 = vpop.f32.mrb[5].mxu0  ;;  %v1318_v29 = vsel %vm461_vm1, %v2700_v28, 0  ;;  %v2701_v30 = vld [vmem:[%s2923_s14 + $0x90] sm:$0xff]  }
 0x2ee   : > { %v804_v34 = vpop.f32.mrb[6].mxu0  ;;  %v1287_v33 = vrot.slane %v2952_v21, 4 }
 0x2ef   : > { %v2507_v35 = vpop.f32.mrb[7].mxu0  ;;  %v3056_v36 = vadd.f32 %v808_v31, %v802_v32  ;;  %v1321_v31 = vsel %vm461_vm1, %v2701_v30, 0  ;;  %v2702_v32 = vld [vmem:[%s2923_s14 + $0x98] sm:$0xff]   ;;  %v1288_v34 = vrot.slane %v2936_v9, 3 }
 0x2f0   : > { %v1324_v35 = vsel %vm461_vm1, %v2702_v32, 0 }
 0x2f1   : > { %v811_v37 = vsel %vm590_vm4, %v3056_v36, 0.0 }
 0x2f2   : > { %812 = vadd.xlane.f32.xlu0 %v811_v37  ;;  %v1289_v37 = vsel %vm438_vm3, %v1288_v34, %v1287_v33 }
 0x2f3   : > { %v1290_v38 = vpack.c.b16 %v1289_v37, %v1289_v37 }
 0x30c   : > { %v944_v41 = vpop.f32.mrb[8].mxu0 }
 0x30d   : > { %v945_v42 = vadd.f32 %v944_v41, %v870_v39  ;;  %v2518_v43 = vpop.f32.mrb[9].mxu0  ;;  %v2703_v39 = vld [vmem:[%s2931_s17 + $0x40] sm:$0xff]   ;;  %v2704_v41 = vld [vmem:[%s2931_s17 + $0x48] sm:$0xff]  }
 0x30e   : > { %v947_v44 = vpop.f32.mrb[10].mxu0  ;;  %v1385_v40 = vsel %vm532_vm2, %v2703_v39, 0  ;;  %v1222_v43 = vrot.slane %v3013_v52, 3 }
 0x30f   : > { %v950_v45 = vpack.c.bf16 %v945_v42, %v945_v42  ;;  %v2519_v46 = vpop.f32.mrb[11].mxu0  ;;  %v1388_v42 = vsel %vm532_vm2, %v2704_v41, 0  ;;  %v1223_v44 = vrot.slane %v3009_v50, 2 }
 0x311   : > { %2525 = vmatmul.mubr.msk.bf16.vlgmr.msra.gmra.mrb[8].mxu1 %vm532_vm2, %v950_v45  ;;  %v1162_v45 = vrot.slane %v3011_v51, %v1077_v15 }
 0x312   : > { %2529 = vmatpush3.bf16.xpose.msra.mxu1 %v1107_v47  ;;  %2536 = vmatprep.mubr.msk.bf16.mxu1 %vm2804_vm0, %v2803_v2  ;;  %v1224_v47 = vsel %vm438_vm3, %v1223_v44, %v1222_v43 }
 0x313   : > { %2530 = vmatprep.subr.bf16.mxu1 %v2803_v2 }
 0x31a   : > { %2531 = vmatpush3.bf16.xpose.msra.mxu1 %v1110_v49 }
 0x31b   : > { %2532 = vmatprep.subr.bf16.mxu1 %v2803_v2 }
 0x322   : > { %2533 = vmatpush3.bf16.xpose.msra.mxu1 %v1113_v54 }
 0x323   : > { %2534 = vmatprep.subr.bf16.mxu1 %v2803_v2 }
 0x32a   : > { %2535 = vmatpush3.bf16.xpose.msra.mxu1 %v1116_v58  ;;  %v1286_v58 = vrot.slane %v2973_v27, %v1285_v57 }
 0x32b   : > { %2560 = vmatprep.subr.bf16.mxu1 %v2803_v2 }
 0x331   : > { %2537 = vmatmul.mubr.msk.bf16.vlgmr.msra.gmra.mrb[12].mxu1 %vm461_vm1, %v1082_v60 }
 0x332   : > { %2564 = vmatprep.mubr.msk.bf16.mxu1 %vm2804_vm0, %v2803_v2  ;;  %2561 = vmatpush3.bf16.xpose.msra.mxu1 %v1385_v40 }
 0x333   : > { %2562 = vmatprep.subr.bf16.mxu1 %v2803_v2 }
 0x33a   : > { %2563 = vmatpush3.bf16.xpose.msra.mxu1 %v1388_v42 }
 0x33b   : > { %2568 = vmatprep.subr.bf16.mxu1 %v2803_v2 }
 0x3e4   : > { %v1008_v6 = vpop.f32.mrb[8].mxu1 }
 0x3e5   : > { %v1009_v8 = vadd.f32 %v1008_v6, %v954_v5  ;;  %v2526_v10 = vpop.f32.mrb[9].mxu1  ;;  %v2706_v5 = vld [vmem:[%s2923_s14 + $0xa8] sm:$0xff]  }
 0x3e6   : > { %v1011_v11 = vpop.f32.mrb[10].mxu1  ;;  %v1526_v6 = vsel %vm461_vm1, %v2706_v5, 0  ;;  %v2708_v10 = vld [vmem:[%s2923_s14 + $0xb8] sm:$0xff]  }
 0x3e7   : > { %v2527_v12 = vpop.f32.mrb[11].mxu1  ;;  %v3093_v13 = vadd.f32 %v1016_v7, %v1009_v8  ;;  %v2707_v7 = vld [vmem:[%s2923_s14 + $0xb0] sm:$0xff]   ;;  %v1495_v11 = vrot.slane %v2952_v21, 5 }
 0x3e8   : > { %v1529_v8 = vsel %vm461_vm1, %v2707_v7, 0  ;;  %v1496_v12 = vrot.slane %v2936_v9, 4 }
 0x3e9   : > { %v1019_v14 = vsel %vm590_vm4, %v3093_v13, 0.0 }
 0x3ea   : > { %1020 = vadd.xlane.f32.xlu1 %v1019_v14  ;;  %v1532_v14 = vsel %vm461_vm1, %v2708_v10, 0  ;;  %v1497_v15 = vsel %vm438_vm3, %v1496_v12, %v1495_v11 }
 0x404   : > { %v1152_v18 = vpop.f32.mrb[12].mxu1 }
 0x405   : > { %v1153_v19 = vadd.f32 %v1152_v18, %v1078_v16  ;;  %v2538_v20 = vpop.f32.mrb[13].mxu1  ;;  %v1498_v16 = vpack.c.b16 %v1497_v15, %v1497_v15  ;;  %v1593_v18 = vsel %vm532_vm2, %v2709_v17, 0  ;;  %v1701_v15 = vsub.s32 6, %v2965_v25  ;;  %v2717_v17 = vld [vmem:[%s2923_s14 + $0xe0] sm:$0xff]  }
 0x406   : > { %v1155_v22 = vpop.f32.mrb[14].mxu1 }
 0x407   : > { %v1158_v23 = vpack.c.bf16 %v1153_v19, %v1153_v19  ;;  %v2539_v24 = vpop.f32.mrb[15].mxu1  ;;  %v2710_v19 = vld [vmem:[%s2931_s17 + $0x58] sm:$0xff]   ;;  %v1430_v22 = vrot.slane %v3013_v52, 4 }
 0x408   : > { %v1596_v20 = vsel %vm532_vm2, %v2710_v19, 0  ;;  %v1370_v24 = vrot.slane %v3011_v51, %v1285_v57 }
 0x409   : > { %2545 = vmatmul.mubr.msk.bf16.vlgmr.msra.gmra.mrb[12].mxu0 %vm532_vm2, %v1158_v23  ;;  %v1431_v23 = vrot.slane %v3009_v50, 3 }
 0x40a   : > { %2549 = vmatpush3.bf16.xpose.msra.mxu0 %v1315_v26  ;;  %2556 = vmatprep.mubr.msk.bf16.mxu0 %vm2804_vm0, %v2803_v2 }
 0x40b   : > { %2550 = vmatprep.subr.bf16.mxu0 %v2803_v2  ;;  %v1432_v28 = vsel %vm438_vm3, %v1431_v23, %v1430_v22 }
 0x412   : > { %2551 = vmatpush3.bf16.xpose.msra.mxu0 %v1318_v29 }
 0x413   : > { %2552 = vmatprep.subr.bf16.mxu0 %v2803_v2 }
 0x41a   : > { %2553 = vmatpush3.bf16.xpose.msra.mxu0 %v1321_v31 }
 0x41b   : > { %2554 = vmatprep.subr.bf16.mxu0 %v2803_v2 }
 0x422   : > { %2555 = vmatpush3.bf16.xpose.msra.mxu0 %v1324_v35  ;;  %v1493_v35 = vsub.s32 5, %v2965_v25 }
 0x423   : > { %2580 = vmatprep.subr.bf16.mxu0 %v2803_v2 }
 0x424   : > { %v1494_v37 = vrot.slane %v2973_v27, %v1493_v35 }
 0x429   : > { %2557 = vmatmul.mubr.msk.bf16.vlgmr.msra.gmra.mrb[16].mxu0 %vm461_vm1, %v1290_v38  ;;  %v2711_v38 = vld [vmem:[%s2923_s14 + $0xc0] sm:$0xff]  }
 0x42a   : > { %2584 = vmatprep.mubr.msk.bf16.mxu0 %vm2804_vm0, %v2803_v2  ;;  %2581 = vmatpush3.bf16.xpose.msra.mxu0 %v1593_v18 }
 0x42b   : > { %2582 = vmatprep.subr.bf16.mxu0 %v2803_v2 }
 0x432   : > { %2583 = vmatpush3.bf16.xpose.msra.mxu0 %v1596_v20 }
 0x433   : > { %2588 = vmatprep.subr.bf16.mxu0 %v2803_v2 }
 0x4dc   : > { %v1216_v46 = vpop.f32.mrb[12].mxu0 }
 0x4dd   : > { %v1217_v48 = vadd.f32 %v1216_v46, %v1162_v45  ;;  %v2546_v49 = vpop.f32.mrb[13].mxu0  ;;  %v1731_v45 = vsel %vm461_vm1, %v2711_v38, 0  ;;  %v2712_v46 = vld [vmem:[%s2923_s14 + $0xc8] sm:$0xff]  }
 0x4de   : > { %v1219_v53 = vpop.f32.mrb[14].mxu0 }
 0x4df   : > { %v2547_v54 = vpop.f32.mrb[15].mxu0  ;;  %v3130_v55 = vadd.f32 %v1224_v47, %v1217_v48  ;;  %v1734_v47 = vsel %vm461_vm1, %v2712_v46, 0  ;;  %v2713_v48 = vld [vmem:[%s2923_s14 + $0xd0] sm:$0xff]   ;;  %v2714_v53 = vld [vmem:[%s2923_s14 + $0xd8] sm:$0xff]   ;;  %v1786_v46 = vrot.slane %v3011_v51, %v1701_v15 }
 0x4e0   : > { %v1737_v49 = vsel %vm461_vm1, %v2713_v48, 0  ;;  %v1703_v54 = vrot.slane %v2952_v21, 6  ;;  %v1740_v57 = vsel %vm461_vm1, %v2714_v53, 0  ;;  %v1021_v48 = vpop.xlane.xlu1 %1020 }
 0x4e1   : > { %v1227_v56 = vsel %vm590_vm4, %v3130_v55, 0.0 }
 0x4e2   : > { %1228 = vadd.xlane.f32.xlu1 %v1227_v56  ;;  %v1704_v56 = vrot.slane %v2936_v9, 5 }
 0x4fc   : > { %v1360_v60 = vpop.f32.mrb[16].mxu0 }
 0x4fd   : > { %v1361_v62 = vadd.f32 %v1360_v60, %v1286_v58  ;;  %v2558_v63 = vpop.f32.mrb[17].mxu0  ;;  %v1705_v58 = vsel %vm438_vm3, %v1704_v56, %v1703_v54  ;;  %v2715_v60 = vld [vmem:[%s2931_s17 + $0x60] sm:$0xff]   ;;  %v1022_v54 = vmul.f32 0.03125, %v1021_v48 }
 0x4fe   : > { %v1363_v0 = vpop.f32.mrb[18].mxu0  ;;  %v1706_v59 = vpack.c.b16 %v1705_v58, %v1705_v58  ;;  %v2716_v63 = vld [vmem:[%s2931_s17 + $0x68] sm:$0xff]  }
 0x4ff   : > { %v1366_v1 = vpack.c.bf16 %v1361_v62, %v1361_v62  ;;  %v2559_v3 = vpop.f32.mrb[19].mxu0  ;;  %v1801_v62 = vsel %vm532_vm2, %v2715_v60, 0  ;;  %v1804_v0 = vsel %vm532_vm2, %v2716_v63, 0  ;;  %v1023_v63 = vsub.f32 %v3093_v13, %v1022_v54 }
 0x500   : > { %v1639_v3 = vrot.slane %v3009_v50, 4  ;;  %v1909_v13 = vsub.s32 7, %v2965_v25 }
 0x501   : > { %2565 = vmatmul.mubr.msk.bf16.vlgmr.msra.gmra.mrb[16].mxu1 %vm532_vm2, %v1366_v1  ;;  %v1638_v1 = vrot.slane %v3013_v52, 5 }
 0x502   : > { %2569 = vmatpush3.bf16.xpose.msra.mxu1 %v1523_v4  ;;  %2576 = vmatprep.mubr.msk.bf16.mxu1 %vm2804_vm0, %v2803_v2  ;;  %v1578_v4 = vrot.slane %v3011_v51, %v1493_v35  ;;  %v1912_v35 = vrot.slane %v2936_v9, 6  ;;  %v1846_v9 = vrot.slane %v3013_v52, 6 }
 0x503   : > { %2570 = vmatprep.subr.bf16.mxu1 %v2803_v2 }
 0x50a   : > { %2571 = vmatpush3.bf16.xpose.msra.mxu1 %v1526_v6  ;;  %v1640_v6 = vsel %vm438_vm3, %v1639_v3, %v1638_v1 }
 0x50b   : > { %2572 = vmatprep.subr.bf16.mxu1 %v2803_v2 }
 0x512   : > { %2573 = vmatpush3.bf16.xpose.msra.mxu1 %v1529_v8 }
 0x513   : > { %2574 = vmatprep.subr.bf16.mxu1 %v2803_v2 }
 0x51a   : > { %2575 = vmatpush3.bf16.xpose.msra.mxu1 %v1532_v14 }
 0x51b   : > { %2600 = vmatprep.subr.bf16.mxu1 %v2803_v2 }
 0x521   : > { %2577 = vmatmul.mubr.msk.bf16.vlgmr.msra.gmra.mrb[20].mxu1 %vm461_vm1, %v1498_v16  ;;  %v1702_v16 = vrot.slane %v2973_v27, %v1701_v15 }
 0x522   : > { %2604 = vmatprep.mubr.msk.bf16.mxu1 %vm2804_vm0, %v2803_v2  ;;  %2601 = vmatpush3.bf16.xpose.msra.mxu1 %v1801_v62 }
 0x523   : > { %2602 = vmatprep.subr.bf16.mxu1 %v2803_v2 }
 0x52a   : > { %2603 = vmatpush3.bf16.xpose.msra.mxu1 %v1804_v0 }
 0x52b   : > { %2608 = vmatprep.subr.bf16.mxu1 %v2803_v2 }
 0x5d4   : > { %v1424_v26 = vpop.f32.mrb[16].mxu1 }
 0x5d5   : > { %v1425_v29 = vadd.f32 %v1424_v26, %v1370_v24  ;;  %v2566_v30 = vpop.f32.mrb[17].mxu1  ;;  %v1939_v26 = vsel %vm461_vm1, %v2717_v17, 0 }
 0x5d6   : > { %v1427_v31 = vpop.f32.mrb[18].mxu1  ;;  %v2719_v30 = vld [vmem:[%s2923_s14 + $0xf0] sm:$0xff]  }
 0x5d7   : > { %v2567_v32 = vpop.f32.mrb[19].mxu1  ;;  %v3167_v33 = vadd.f32 %v1432_v28, %v1425_v29  ;;  %v2718_v28 = vld [vmem:[%s2923_s14 + $0xe8] sm:$0xff]   ;;  %v1945_v31 = vsel %vm461_vm1, %v2719_v30, 0 }
 0x5d8   : > { %v1942_v29 = vsel %vm461_vm1, %v2718_v28, 0  ;;  %v2720_v32 = vld [vmem:[%s2923_s14 + $0xf8] sm:$0xff]   ;;  %s2745_s14 = scalar_lea.vmem %s2744_s13, 512 }
 0x5d9   : > { %v1435_v34 = vsel %vm590_vm4, %v3167_v33, 0.0 }
 0x5da   : > { %1436 = vadd.xlane.f32.xlu0 %v1435_v34  ;;  %v1911_v34 = vrot.slane %v2952_v21, 7  ;;  %v593_v21 = vpop.xlane.xlu0 %592 }
 0x5dc   : > { %v1913_v38 = vsel %vm438_vm3, %v1912_v35, %v1911_v34  ;;  %v2805_v34 = vmov 1966171168  }
 0x5dd   : > { %v621_v35 = vunpack.c.l.s4 %v2805_v34 }
 0x5f4   : > { %v1568_v39 = vpop.f32.mrb[20].mxu1 }
 0x5f5   : > { %v1569_v40 = vadd.f32 %v1568_v39, %v1494_v37  ;;  %v2578_v41 = vpop.f32.mrb[21].mxu1  ;;  %v1948_v37 = vsel %vm461_vm1, %v2720_v32, 0  ;;  %v1914_v39 = vpack.c.b16 %v1913_v38, %v1913_v38  ;;  %v622_v38 = vunpack.c.0.s8 %v621_v35 }
 0x5f6   : > { %v1571_v42 = vpop.f32.mrb[22].mxu1 }
 0x5f7   : > { %v1574_v43 = vpack.c.bf16 %v1569_v40, %v1569_v40  ;;  %v2579_v44 = vpop.f32.mrb[23].mxu1  ;;  %v2721_v40 = vld [vmem:[%s2931_s17 + $0x70] sm:$0xff]   ;;  %v2722_v42 = vld [vmem:[%s2931_s17 + $0x78] sm:$0xff]   ;;  %s2237_s17 = sshll.u32 %s2909_s21, 4 }
 0x5f8   : > { %v2009_v41 = vsel %vm532_vm2, %v2721_v40, 0  ;;  %v1847_v44 = vrot.slane %v3009_v50, 5  ;;  %v3259_v40 = vld [vmem:[%s3416_s5] ss:$0 sm:$0xff]  ;;  %s3277_s18 = scalar_lea.vmem [#allocation3], %s2237_s17 }
 0x5f9   : > { %2585 = vmatmul.mubr.msk.bf16.vlgmr.msra.gmra.mrb[20].mxu0 %vm532_vm2, %v1574_v43  ;;  %v2012_v43 = vsel %vm532_vm2, %v2722_v42, 0  ;;  %v3264_v42 = vld [vmem:[%s3417_s6] ss:$0 sm:$0xff]  ;;  %s2114_s20 = sshll.u32 %s3277_s18, 4  ;;  %s3362_s20 = int_to_ptr.vmem [resolvable:$true] %s2114_s20 }
 0x5fa   : > { %2589 = vmatpush3.bf16.xpose.msra.mxu0 %v1731_v45  ;;  %2596 = vmatprep.mubr.msk.bf16.mxu0 %vm2804_vm0, %v2803_v2  ;;  %v595_v45 = vmul.f32 0.03125, %v593_v21  ;;  %v1848_v53 = vsel %vm438_vm3, %v1847_v44, %v1846_v9  ;;  %s2739_s8 = scalar_lea.vmem %s3362_s20, 256  ;;  %p2746_p4 = scmp.lt.s32.totalorder %s3362_s20, %s2744_s13 }
 0x5fb   : > { %2590 = vmatprep.subr.bf16.mxu0 %v2803_v2  ;;  %p2740_p1 = scmp.ne.s32.totalorder %s3362_s20, %s2739_s8  ;;  %p2747_p5 = scmp.lt.s32.totalorder %s2745_s14, %s2739_s8 }
 0x5fd   : > { %p2741_p2 = pnand %p2740_p1, %p2889_p6  ;;  %p2748_p7 = por %p2747_p5, %p2746_p4 }
 0x5ff   : > { %p2742_p3 = pneg %p2741_p2 }
 0x601   : > { %p2749_p10 = pnand %p2748_p7, %p2742_p3 }
 0x602   : > { %2591 = vmatpush3.bf16.xpose.msra.mxu0 %v1734_v47  ;;  %v3236_v47 = vpop.xlane.xlu0 %812 }
 0x603   : > { %2592 = vmatprep.subr.bf16.mxu0 %v2803_v2 }
 0x60a   : > { %2593 = vmatpush3.bf16.xpose.msra.mxu0 %v1737_v49 }
 0x60b   : > { %2594 = vmatprep.subr.bf16.mxu0 %v2803_v2 }
 0x612   : > { %2595 = vmatpush3.bf16.xpose.msra.mxu0 %v1740_v57 }
 0x613   : > { %2620 = vmatprep.subr.bf16.mxu0 %v2803_v2 }
 0x619   : > { %2597 = vmatmul.mubr.msk.bf16.vlgmr.msra.gmra.mrb[24].mxu0 %vm461_vm1, %v1706_v59 }
 0x61a   : > { %2624 = vmatprep.mubr.msk.bf16.mxu0 %vm2804_vm0, %v2803_v2  ;;  %2621 = vmatpush3.bf16.xpose.msra.mxu0 %v2009_v41 }
 0x61b   : > { %2622 = vmatprep.subr.bf16.mxu0 %v2803_v2 }
 0x622   : > { %2623 = vmatpush3.bf16.xpose.msra.mxu0 %v2012_v43  ;;  %v3267_v43 = vsub.s32 %v622_v38, %v2965_v25 }
 0x667   : > { %v1437_v58 = vpop.xlane.xlu0 %1436 }
 0x668   : > { %v1438_v0 = vmul.f32 0.03125, %v1437_v58 }
 0x6cc   : > { %v1632_v5 = vpop.f32.mrb[20].mxu0 }
 0x6cd   : > { %v1633_v7 = vadd.f32 %v1632_v5, %v1578_v4  ;;  %v2586_v8 = vpop.f32.mrb[21].mxu0  ;;  %v1439_v4 = vsub.f32 %v3167_v33, %v1438_v0 }
 0x6ce   : > { %v1635_v10 = vpop.f32.mrb[22].mxu0 }
 0x6cf   : > { %v2587_v11 = vpop.f32.mrb[23].mxu0  ;;  %v3204_v12 = vadd.f32 %v1640_v6, %v1633_v7  ;;  %v1024_v6 = vmul.f32 %v1023_v63, %v1023_v63  ;;  %v1440_v7 = vmul.f32 %v1439_v4, %v1439_v4  ;;  %v1910_v10 = vrot.slane %v2973_v27, %v1909_v13 }
 0x6d1   : > { %v1643_v14 = vsel %vm590_vm4, %v3204_v12, 0.0  ;;  %v1441_v8 = vsel %vm590_vm4, %v1440_v7, 0.0  ;;  %v814_v7 = vmul.f32 0.03125, %v3236_v47 }
 0x6d2   : > { %1644 = vadd.xlane.f32.xlu1 %v1643_v14 }
 0x6ec   : > { %v1776_v18 = vpop.f32.mrb[24].mxu0 }
 0x6ed   : > { %v1777_v19 = vadd.f32 %v1776_v18, %v1702_v16  ;;  %v2598_v20 = vpop.f32.mrb[25].mxu0 }
 0x6ee   : > { %v1779_v22 = vpop.f32.mrb[26].mxu0 }
 0x6ef   : > { %v1782_v23 = vpack.c.bf16 %v1777_v19, %v1777_v19  ;;  %v2599_v24 = vpop.f32.mrb[27].mxu0 }
 0x6f1   : > { %2605 = vmatmul.mubr.msk.bf16.vlgmr.msra.gmra.mrb[24].mxu1 %vm532_vm2, %v1782_v23 }
 0x6f2   : > { %2609 = vmatpush3.bf16.xpose.msra.mxu1 %v1939_v26  ;;  %2616 = vmatprep.mubr.msk.bf16.mxu1 %vm2804_vm0, %v2803_v2 }
 0x6f3   : > { %2610 = vmatprep.subr.bf16.mxu1 %v2803_v2 }
 0x6fa   : > { %2611 = vmatpush3.bf16.xpose.msra.mxu1 %v1942_v29 }
 0x6fb   : > { %2612 = vmatprep.subr.bf16.mxu1 %v2803_v2 }
 0x702   : > { %2613 = vmatpush3.bf16.xpose.msra.mxu1 %v1945_v31 }
 0x703   : > { %2614 = vmatprep.subr.bf16.mxu1 %v2803_v2  ;;  %v596_v2 = vsub.f32 %v3019_v61, %v595_v45  ;;  %v1025_v61 = vsel %vm590_vm4, %v1024_v6, 0.0  ;;  %v2054_v6 = vrot.slane %v3013_v52, 7 }
 0x705   : > { %v597_v3 = vmul.f32 %v596_v2, %v596_v2 }
 0x707   : > { %v598_v5 = vsel %vm590_vm4, %v597_v3, 0.0 }
 0x70a   : > { %2615 = vmatpush3.bf16.xpose.msra.mxu1 %v1948_v37 }
 0x711   : > { %2617 = vmatmul.mubr.msk.bf16.vlgmr.msra.gmra.mrb[28].mxu1 %vm461_vm1, %v1914_v39 }
 0x7c4   : > { %v1840_v49 = vpop.f32.mrb[24].mxu1 }
 0x7c5   : > { %v1841_v56 = vadd.f32 %v1840_v49, %v1786_v46  ;;  %v2606_v57 = vpop.f32.mrb[25].mxu1 }
 0x7c6   : > { %v1843_v59 = vpop.f32.mrb[26].mxu1 }
 0x7c7   : > { %v2607_v60 = vpop.f32.mrb[27].mxu1  ;;  %v1850_v62 = vadd.f32 %v1848_v53, %v1841_v56 }
 0x7c9   : > { %v1851_v1 = vsel %vm590_vm4, %v1850_v62, 0.0 }
 0x7ca   : > { %1852 = vadd.xlane.f32.xlu0 %v1851_v1 }
 0x7ce   : > { %599 = vadd.xlane.f32.xlu0 %v598_v5 }
 0x7d2   : > { %1026 = vadd.xlane.f32.xlu0 %v1025_v61  ;;  %v2055_v61 = vrot.slane %v3009_v50, 6 }
 0x7d6   : > { %1442 = vadd.xlane.f32.xlu0 %v1441_v8  ;;  %v1994_v8 = vrot.slane %v3011_v51, %v1909_v13 }
 0x7e4   : > { %v1984_v11 = vpop.f32.mrb[28].mxu1 }
 0x7e5   : > { %v1985_v14 = vadd.f32 %v1984_v11, %v1910_v10  ;;  %v2618_v33 = vpop.f32.mrb[29].mxu1  ;;  %v1229_v10 = vpop.xlane.xlu1 %1228 }
 0x7e6   : > { %v1987_v15 = vpop.f32.mrb[30].mxu1  ;;  %v815_v33 = vsub.f32 %v3056_v36, %v814_v7 }
 0x7e7   : > { %v1990_v16 = vpack.c.bf16 %v1985_v14, %v1985_v14  ;;  %v2619_v17 = vpop.f32.mrb[31].mxu1  ;;  %v2056_v14 = vsel %vm438_vm3, %v2055_v61, %v2054_v6  ;;  %v1230_v15 = vmul.f32 0.03125, %v1229_v10 }
 0x7e9   : > { %2625 = vmatmul.mubr.msk.bf16.vlgmr.msra.gmra.mrb[28].mxu0 %vm532_vm2, %v1990_v16  ;;  %v1231_v50 = vsub.f32 %v3130_v55, %v1230_v15 }
 0x857   : > { %v1853_v18 = vpop.xlane.xlu0 %1852 }
 0x858   : > { %v1854_v19 = vmul.f32 0.03125, %v1853_v18  ;;  %v1645_v18 = vpop.xlane.xlu1 %1644 }
 0x859   : > { %v1646_v47 = vmul.f32 0.03125, %v1645_v18 }
 0x85a   : > { %v3251_v20 = vsub.f32 %v1850_v62, %v1854_v19 }
 0x85b   : > { %v600_v22 = vpop.xlane.xlu0 %599  ;;  %v1647_v51 = vsub.f32 %v3204_v12, %v1646_v47 }
 0x85c   : > { %v601_v23 = vmul.f32 0.03125, %v600_v22  ;;  %v1856_v24 = vmul.f32 %v3251_v20, %v3251_v20 }
 0x85e   : > { %v602_v26 = vadd.f32 1e-05, %v601_v23  ;;  %v1857_v27 = vsel %vm590_vm4, %v1856_v24, 0.0  ;;  %v816_v23 = vmul.f32 %v815_v33, %v815_v33  ;;  %v1232_v24 = vmul.f32 %v1231_v50, %v1231_v50 }
 0x85f   : > { %1858 = vadd.xlane.f32.xlu0 %v1857_v27  ;;  %v1027_v28 = vpop.xlane.xlu0 %1026 }
 0x860   : > { %2723 = vrsqrt.f32 %v602_v26  ;;  %v1028_v29 = vmul.f32 0.03125, %v1027_v28  ;;  %v817_v13 = vsel %vm590_vm4, %v816_v23, 0.0  ;;  %v1233_v36 = vsel %vm590_vm4, %v1232_v24, 0.0 }
 0x861   : > { %v1648_v26 = vmul.f32 %v1647_v51, %v1647_v51 }
 0x862   : > { %v1029_v30 = vadd.f32 1e-05, %v1028_v29 }
 0x863   : > { %v1443_v31 = vpop.xlane.xlu0 %1442  ;;  %v1649_v27 = vsel %vm590_vm4, %v1648_v26, 0.0 }
 0x864   : > { %2725 = vrsqrt.f32 %v1029_v30  ;;  %v1444_v32 = vmul.f32 0.03125, %v1443_v31 }
 0x866   : > { %v1445_v37 = vadd.f32 1e-05, %v1444_v32 }
 0x868   : > { %2727 = vrsqrt.f32 %v1445_v37 }
 0x86a   : > { %v2724_v39 = vpop.eup %2723 }
 0x86b   : > { %v604_v41 = vmul.f32 %v2724_v39, %v596_v2 }
 0x86d   : > { %v611_v21 = vmul.f32 %v3259_v40, %v604_v41 }
 0x86e   : > { %v2726_v9 = vpop.eup %2725 }
 0x86f   : > { %v618_v44 = vadd.f32 %v3264_v42, %v611_v21  ;;  %v1031_v45 = vmul.f32 %v2726_v9, %v1023_v63 }
 0x871   : > { %v626_v46 = vrot.slane %v618_v44, %v3267_v43  ;;  %v1032_v48 = vmul.f32 %v3259_v40, %v1031_v45 }
 0x872   : > { %v2728_v49 = vpop.eup %2727 }
 0x873   : > { %v627_v53 = vcombine.high %v626_v46, %v626_v46  ;;  %v634_v2 = vrot.slane %v626_v46, %v3267_v43  ;;  %v1033_v54 = vadd.f32 %v3264_v42, %v1032_v48  ;;  %v1447_v56 = vmul.f32 %v2728_v49, %v1439_v4 }
 0x875   : > { %v641_v57 = vrot.slane %v627_v53, %v3267_v43  ;;  %645 = vst.msk [vmem:[%s3277_s18] sm:$0x1] %vm644_vm5, %v634_v2  ;;  %v1041_v58 = vrot.slane %v1033_v54, %v3267_v43  ;;  %v1448_v59 = vmul.f32 %v3259_v40, %v1447_v56 }
 0x877   : > { %646 = vst.msk [vmem:[%s3277_s18 + $0x8] sm:$0x1] %vm644_vm5, %v641_v57  ;;  %v1042_v60 = vcombine.high %v1041_v58, %v1041_v58  ;;  %v1049_v62 = vrot.slane %v1041_v58, %v3267_v43  ;;  %v1449_v63 = vadd.f32 %v3264_v42, %v1448_v59 }
 0x879   : > { %v1056_v0 = vrot.slane %v1042_v60, %v3267_v43  ;;  %1059 = vst.msk [vmem:[%s3277_s18 + $0x2] sm:$0x1] %vm644_vm5, %v1049_v62  ;;  %v1457_v1 = vrot.slane %v1449_v63, %v3267_v43 }
 0x87b   : > { %1060 = vst.msk [vmem:[%s3277_s18 + $0xa] sm:$0x1] %vm644_vm5, %v1056_v0  ;;  %v1458_v3 = vcombine.high %v1457_v1, %v1457_v1  ;;  %v1465_v4 = vrot.slane %v1457_v1, %v3267_v43 }
 0x87d   : > { %v1472_v5 = vrot.slane %v1458_v3, %v3267_v43  ;;  %1475 = vst.msk [vmem:[%s3277_s18 + $0x4] sm:$0x1] %vm644_vm5, %v1465_v4 }
 0x87f   : > { %1476 = vst.msk [vmem:[%s3277_s18 + $0xc] sm:$0x1] %vm644_vm5, %v1472_v5 }
 0x8bc   : > { %v2048_v11 = vpop.f32.mrb[28].mxu0 }
 0x8bd   : > { %v2049_v16 = vadd.f32 %v2048_v11, %v1994_v8  ;;  %v2626_v17 = vpop.f32.mrb[29].mxu0 }
 0x8be   : > { %v2051_v19 = vpop.f32.mrb[30].mxu0 }
 0x8bf   : > { %v2627_v52 = vpop.f32.mrb[31].mxu0  ;;  %v2058_v22 = vadd.f32 %v2056_v14, %v2049_v16 }
 0x8c1   : > { %v2059_v25 = vsel %vm590_vm4, %v2058_v22, 0.0 }
 0x8c2   : > { %2060 = vadd.xlane.f32.xlu1 %v2059_v25 }
 0x8c6   : > { %818 = vadd.xlane.f32.xlu1 %v817_v13 }
 0x8ca   : > { %1234 = vadd.xlane.f32.xlu1 %v1233_v36 }
 0x8ce   : > { %1650 = vadd.xlane.f32.xlu1 %v1649_v27 }
 0x8ec   : > { %v1859_v55 = vpop.xlane.xlu0 %1858 }
 0x8ed   : > { %v1860_v28 = vmul.f32 0.03125, %v1859_v55 }
 0x8ef   : > { %v1861_v29 = vadd.f32 1e-05, %v1860_v28 }
 0x8f1   : > { %2729 = vrsqrt.f32 %v1861_v29 }
 0x8fb   : > { %v2730_v30 = vpop.eup %2729 }
 0x8fc   : > { %v1863_v12 = vmul.f32 %v2730_v30, %v3251_v20 }
 0x8fe   : > { %v1864_v31 = vmul.f32 %v3259_v40, %v1863_v12 }
 0x900   : > { %v1865_v32 = vadd.f32 %v3264_v42, %v1864_v31 }
 0x902   : > { %v1873_v34 = vrot.slane %v1865_v32, %v3267_v43 }
 0x904   : > { %v1874_v35 = vcombine.high %v1873_v34, %v1873_v34  ;;  %v1881_v37 = vrot.slane %v1873_v34, %v3267_v43 }
 0x906   : > { %v1888_v38 = vrot.slane %v1874_v35, %v3267_v43  ;;  %1891 = vst.msk [vmem:[%s3277_s18 + $0x6] sm:$0x1] %vm644_vm5, %v1881_v37 }
 0x908   : > { %1892 = vst.msk [vmem:[%s3277_s18 + $0xe] sm:$0x1] %vm644_vm5, %v1888_v38 }
 0x94f   : > { %v2061_v39 = vpop.xlane.xlu1 %2060 }
 0x950   : > { %v2062_v41 = vmul.f32 0.03125, %v2061_v39 }
 0x952   : > { %v2063_v21 = vsub.f32 %v2058_v22, %v2062_v41 }
 0x953   : > { %v819_v9 = vpop.xlane.xlu1 %818 }
 0x954   : > { %v820_v20 = vmul.f32 0.03125, %v819_v9  ;;  %v2064_v44 = vmul.f32 %v2063_v21, %v2063_v21 }
 0x956   : > { %v821_v45 = vadd.f32 1e-05, %v820_v20  ;;  %v2065_v46 = vsel %vm590_vm4, %v2064_v44, 0.0 }
 0x957   : > { %2066 = vadd.xlane.f32.xlu1 %v2065_v46  ;;  %v1235_v48 = vpop.xlane.xlu1 %1234 }
 0x958   : > { %2731 = vrsqrt.f32 %v821_v45  ;;  %v1236_v49 = vmul.f32 0.03125, %v1235_v48 }
 0x95a   : > { %v1237_v53 = vadd.f32 1e-05, %v1236_v49 }
 0x95b   : > { %v1651_v2 = vpop.xlane.xlu1 %1650 }
 0x95c   : > { %2733 = vrsqrt.f32 %v1237_v53  ;;  %v1652_v54 = vmul.f32 0.03125, %v1651_v2 }
 0x95e   : > { %v1653_v56 = vadd.f32 1e-05, %v1652_v54 }
 0x960   : > { %2735 = vrsqrt.f32 %v1653_v56 }
 0x962   : > { %v2732_v57 = vpop.eup %2731 }
 0x963   : > { %v823_v58 = vmul.f32 %v2732_v57, %v815_v33 }
 0x965   : > { %v824_v59 = vmul.f32 %v3259_v40, %v823_v58 }
 0x966   : > { %v2734_v60 = vpop.eup %2733 }
 0x967   : > { %v825_v62 = vadd.f32 %v3264_v42, %v824_v59  ;;  %v1239_v63 = vmul.f32 %v2734_v60, %v1231_v50 }
 0x969   : > { %v833_v0 = vrot.slane %v825_v62, %v3267_v43  ;;  %v1240_v1 = vmul.f32 %v3259_v40, %v1239_v63 }
 0x96a   : > { %v2736_v3 = vpop.eup %2735 }
 0x96b   : > { %v834_v4 = vcombine.high %v833_v0, %v833_v0  ;;  %v841_v5 = vrot.slane %v833_v0, %v3267_v43  ;;  %v1241_v6 = vadd.f32 %v3264_v42, %v1240_v1  ;;  %v1655_v61 = vmul.f32 %v2736_v3, %v1647_v51 }
 0x96d   : > { %v848_v7 = vrot.slane %v834_v4, %v3267_v43  ;;  %851 = vst.msk [vmem:[%s3277_s18 + $0x1] sm:$0x1] %vm644_vm5, %v841_v5  ;;  %v1249_v8 = vrot.slane %v1241_v6, %v3267_v43  ;;  %v1656_v10 = vmul.f32 %v3259_v40, %v1655_v61 }
 0x96f   : > { %852 = vst.msk [vmem:[%s3277_s18 + $0x9] sm:$0x1] %vm644_vm5, %v848_v7  ;;  %v1250_v11 = vcombine.high %v1249_v8, %v1249_v8  ;;  %v1257_v14 = vrot.slane %v1249_v8, %v3267_v43  ;;  %v1657_v33 = vadd.f32 %v3264_v42, %v1656_v10 }
 0x971   : > { %v1264_v15 = vrot.slane %v1250_v11, %v3267_v43  ;;  %1267 = vst.msk [vmem:[%s3277_s18 + $0x3] sm:$0x1] %vm644_vm5, %v1257_v14  ;;  %v1665_v16 = vrot.slane %v1657_v33, %v3267_v43 }
 0x973   : > { %1268 = vst.msk [vmem:[%s3277_s18 + $0xb] sm:$0x1] %vm644_vm5, %v1264_v15  ;;  %v1666_v17 = vcombine.high %v1665_v16, %v1665_v16  ;;  %v1673_v18 = vrot.slane %v1665_v16, %v3267_v43 }
 0x975   : > { %v1680_v19 = vrot.slane %v1666_v17, %v3267_v43  ;;  %1683 = vst.msk [vmem:[%s3277_s18 + $0x5] sm:$0x1] %vm644_vm5, %v1673_v18 }
 0x977   : > { %1684 = vst.msk [vmem:[%s3277_s18 + $0xd] sm:$0x1] %vm644_vm5, %v1680_v19 }
 0x9e4   : > { %v2067_v52 = vpop.xlane.xlu1 %2066 }
 0x9e5   : > { %v2068_v22 = vmul.f32 0.03125, %v2067_v52 }
 0x9e7   : > { %v2069_v50 = vadd.f32 1e-05, %v2068_v22 }
 0x9e9   : > { %2737 = vrsqrt.f32 %v2069_v50 }
 0x9f3   : > { %v2738_v47 = vpop.eup %2737 }
 0x9f4   : > { %v2071_v25 = vmul.f32 %v2738_v47, %v2063_v21 }
 0x9f6   : > { %v2072_v23 = vmul.f32 %v3259_v40, %v2071_v25 }
 0x9f8   : > { %v2073_v51 = vadd.f32 %v3264_v42, %v2072_v23 }
 0x9fa   : > { %v2081_v13 = vrot.slane %v2073_v51, %v3267_v43 }
 0x9fc   : > { %v2082_v24 = vcombine.high %v2081_v13, %v2081_v13  ;;  %v2089_v36 = vrot.slane %v2081_v13, %v3267_v43 }
 0x9fe   : > { %v2096_v40 = vrot.slane %v2082_v24, %v3267_v43  ;;  %2099 = vst.msk [vmem:[%s3277_s18 + $0x7] sm:$0x1] %vm644_vm5, %v2089_v36 }
 0xa00   : > { %2100 = vst.msk [vmem:[%s3277_s18 + $0xf] sm:$0x1] %vm644_vm5, %v2096_v40 }
 0xa01   : > { %2752 = shalt.err (!%p2749_p10)
}
 0xa02   : > { %s2753_s15 = scalar_lea.hbm %s3360_s29, 256  ;;  %s2757_s18 = scalar_lea.hbm %s3418_s7, 512 }
 0xa03   : > { %p2754_p11 = scmp.ne.s32.totalorder %s3360_s29, %s2753_s15  ;;  %p2758_p0 = scmp.lt.u32.totalorder %s3360_s29, %s3418_s7 }
 0xa04   : > { %p2759_p1 = scmp.lt.u32.totalorder %s2757_s18, %s2753_s15  ;;  %p2761_p3 = scmp.lt.u32.totalorder %s2753_s15, %s3360_s29 }
 0xa05   : > { %p2755_p12 = pnand %p2754_p11, %p2889_p6 }
 0xa06   : > { %p2760_p2 = por %p2759_p1, %p2758_p0 }
 0xa07   : > { %p2756_p13 = pneg %p2755_p12 }
 0xa08   : > { %p2762_p4 = por %p2761_p3, %p2760_p2 }
 0xa0a   : > { %p2763_p5 = pnand %p2762_p4, %p2756_p13 }
 0xa0c   : > { %2766 = shalt.err (!%p2763_p5)
}
 0xa0d   : > { %s2807_s23 = smov 128   ;;  %s2808_s8 = smov 256  }
 0xa0e   : > { %s2809_s9 = smov 8  }
 0xa0f   : > { %2628 = dma.vmem_to_hbm [thread:$0]  (%p2889_p6), %s3362_s20, 256, %s3360_s29, %s2102_s28, %s2807_s23, %s2808_s8, %s2809_s9  }
 0xa10 PF: > { %s2129_s13 = sand.u32 1, %s2789_s24   ;;  %p2631_p7 = pnand %p2232_p9, %p2893_p8 }
 0xa11   : > { %s2130_s14 = scalar_lea.sflag [#allocation4], %s2129_s13 }
 0xa12   : > { %2784 = dma.done.wait (!%p2631_p7), %s2130_s14, 256  }
 0xa13   : > { %2786 = vsyncadd (!%p2631_p7), %s2130_s14, 4294967040  ;;  %p17_p10 = scmp.ge.s32.totalorder %s2875_s30, 4   ;;  %s3421_s24 = smov %s2793_s25 }
 0xa14   : > { %s3422_s25 = smov %s2797_s26  ;;  %s3423_s26 = smov %s2887_s10 }
 0xa15   : > { %s3424_s27 = smov %s2875_s30  ;;  %19 = sbr.rel (!%p17_p10) target bundleno = 3 (0x3), region = 155 }
 0xa1c   :  { %2135 = vsyncpa [#allocation4], 1 }
 0xa1d   :  { %2137 = vsyncpa [#allocation4 + $0x1], 1 }

</bundles_post_ra>
